<compile_context>
chip_gen: v7x
topology: tpu7x:2x2x1
jax: 0.10.0
libtpu: 0.0.40
codegen_flags: <defaults>
</compile_context>

<pallas_src>
import math

import jax
import jax.numpy as jnp
from jax import lax
from jax.experimental import pallas as pl
from jax.experimental.pallas import tpu as pltpu

# ---------------- configuration (small, consistent with the module) ----------
BATCH = 2
HISTORY_DAYS = 8          # T
N_SEQ = 2                 # number of FeatureType.SEQUENCE features
SUB_BLOCKS = 2
KERNELS = 2
GATE_CH = 8
RESID_CH = 8
SKIP_CH = 8
END_CH = 8
MIXTURE = 4
EMB_SEQ_SIZE = 16         # vocab of the EMBEDDING_SEQUENCE feature
EMB_SIZE = 16             # vocab of the EMBEDDING feature
N_BLOCKS = int(math.log2(HISTORY_DAYS - 1)) + 1   # = 3 for T=8
N_SUB_TOT = N_BLOCKS * SUB_BLOCKS

EPS = float(jnp.finfo(jnp.float32).eps)           # torch.finfo().eps

PAD = 8                   # zero rows in front of the activation staging buffer
assert KERNELS - 1 <= PAD


def _round8(n):
    return (n + 7) // 8 * 8


def _is_pow2(n):
    return (n & (n - 1)) == 0


# ---------------- packed parameter layout (static row offsets) ----------------
START_ROWS = N_SEQ + RESID_CH          # start conv + identity block for embeddings
SG_ROWS = KERNELS * RESID_CH           # fused signal|gate conv (taps stacked on input)
DIL_ROWS = 2 * RESID_CH                # dilated conv (2 taps stacked on input)
SKIP_ROWS = (N_BLOCKS + 1) * RESID_CH  # all per-block skips + final skip, stacked
W_COLS = max(RESID_CH, 2 * GATE_CH, SKIP_CH, END_CH, 3 * MIXTURE)

START_OFF = 0
SG_OFF = _round8(START_ROWS)
OUT_OFF = SG_OFF + N_SUB_TOT * _round8(SG_ROWS)
DIL_OFF = OUT_OFF + N_SUB_TOT * _round8(GATE_CH)
SKIP_OFF = DIL_OFF + N_BLOCKS * _round8(DIL_ROWS)
END_OFF = SKIP_OFF + _round8(SKIP_ROWS)
HEAD_OFF = END_OFF + _round8(SKIP_CH)
W_ROWS = HEAD_OFF + _round8(END_CH)

B_SG = 0                               # fused sig|gate bias, width 2G
B_OUT = N_SUB_TOT                      # output-conv bias, width R
B_DIL = 2 * N_SUB_TOT                  # dilated-conv bias, width R
B_SKIP = 2 * N_SUB_TOT + N_BLOCKS      # sum(skip_b) + fskip_b, width S
B_END = B_SKIP + 1                     # end-conv bias, width E
B_HEAD = B_END + 1                     # [logits|mean|std] bias, width 3M
B_ROWS = _round8(B_HEAD + 1)


# ---------------- the kernel ---------------------------------------------------
def wavenet_kernel(x_ref, w_ref, b_ref, out_ref, sbuf_ref):
    f32 = jnp.float32
    n_batch = out_ref.shape[0]
    t_cur = x_ref.shape[0] // n_batch

    # Zero the leading pad rows once (rows >= PAD are always (re)written before
    # being read).  All reads that can hit rows < PAD are additionally masked
    # with jnp.where, so this is belt-and-braces against uninitialized VMEM.
    sbuf_ref[0:PAD, :] = jnp.zeros((PAD, RESID_CH), f32)

    # start conv + embedding add: the wrapper appended (emb_seq + emb + start_b)
    # as extra input channels, and the packed start weight carries an identity
    # block for them -> a single matmul.
    y = jnp.dot(x_ref[...], w_ref[START_OFF:START_OFF + START_ROWS, 0:RESID_CH],
                preferred_element_type=f32)                         # (B*T, R)

    last_rows = []                       # per-block "last time step" activations

    for bi in range(N_BLOCKS):
        n_rows = n_batch * t_cur
        # hoisted per-block mask: time position of every stacked row.
        row = lax.broadcasted_iota(jnp.int32, (n_rows, 1), 0)
        if _is_pow2(t_cur):
            tpos = jnp.bitwise_and(row, t_cur - 1)
        else:
            tpos = row % t_cur
        keep = {s: tpos >= s for s in range(1, KERNELS)}

        # ---- sub blocks: fused gated causal conv + residual ----
        for si in range(SUB_BLOCKS):
            sub = bi * SUB_BLOCKS + si
            z = y
            # stage activations; rows [PAD-s, PAD) stay zero => causal pad.
            sbuf_ref[PAD:PAD + n_rows, :] = z
            taps = []
            for j in range(KERNELS):
                s = KERNELS - 1 - j                   # tap j multiplies x[t - s]
                if s == 0:
                    taps.append(z)
                else:
                    v = sbuf_ref[PAD - s:PAD - s + n_rows, :]
                    taps.append(jnp.where(keep[s], v, 0.0))
            x_f = jnp.concatenate(taps, axis=-1)      # (n_rows, k*R)

            r0 = SG_OFF + sub * _round8(SG_ROWS)
            sg = jnp.dot(x_f, w_ref[r0:r0 + SG_ROWS, 0:2 * GATE_CH],
                         preferred_element_type=f32)
            sg = sg + b_ref[B_SG + sub:B_SG + sub + 1, 0:2 * GATE_CH]
            sig = jnp.maximum(sg[:, 0:GATE_CH], 0.0)                       # relu
            gate = pl.reciprocal(1.0 + jnp.exp(-sg[:, GATE_CH:2 * GATE_CH]),
                                 approx=True)                              # sigmoid
            r0 = OUT_OFF + sub * _round8(GATE_CH)
            o = jnp.dot(sig * gate, w_ref[r0:r0 + GATE_CH, 0:RESID_CH],
                        preferred_element_type=f32)
            y = o + b_ref[B_OUT + sub:B_OUT + sub + 1, 0:RESID_CH] + z     # residual

        # ---- stage y once; reuse it for the skip pick and the down-sampling ----
        sbuf_ref[PAD:PAD + n_rows, :] = y
        # "last time step of every batch element" pick (strided); the skip conv
        # itself is deferred and fused with all other skip convs at the end.
        last_rows.append(
            sbuf_ref[pl.ds(PAD + t_cur - 1, n_batch, stride=t_cur), :])   # (B, R)

        # ---- dilated conv: pad (1,0), kernel=2, stride=2, fused in one matmul ----
        # TODO(synk): even time length assumed (true for power-of-two history_days).
        assert t_cur % 2 == 0, "stride-2 block expects an even time length"
        t_new = t_cur // 2
        n_half = n_batch * t_new
        half_row = lax.broadcasted_iota(jnp.int32, (n_half, 1), 0)
        if _is_pow2(t_new):
            half_t = jnp.bitwise_and(half_row, t_new - 1)
        else:
            half_t = half_row % t_new
        keep_prev = half_t >= 1
        x_cur = sbuf_ref[pl.ds(PAD, n_half, stride=2), :]                  # y[2t]
        x_prev = sbuf_ref[pl.ds(PAD - 1, n_half, stride=2), :]             # y[2t-1]
        x_prev = jnp.where(keep_prev, x_prev, 0.0)                         # batch edge
        x_d = jnp.concatenate([x_prev, x_cur], axis=-1)                    # (n_half, 2R)
        r0 = DIL_OFF + bi * _round8(DIL_ROWS)
        y = jnp.dot(x_d, w_ref[r0:r0 + DIL_ROWS, 0:RESID_CH],
                    preferred_element_type=f32)
        y = y + b_ref[B_DIL + bi:B_DIL + bi + 1, 0:RESID_CH]
        t_cur = t_new

    # ---- fused skips: per-block skip convs + final skip conv in ONE matmul ----
    # After the last block t_cur == 1, so y is already (B, R).
    last_rows.append(y)
    skip_in = jnp.concatenate(last_rows, axis=-1)                # (B, (Nb+1)*R)
    skips = jnp.dot(skip_in, w_ref[SKIP_OFF:SKIP_OFF + SKIP_ROWS, 0:SKIP_CH],
                    preferred_element_type=jnp.float32)
    skips = skips + b_ref[B_SKIP:B_SKIP + 1, 0:SKIP_CH]          # sum(skip_b)+fskip_b

    # ---- head: relu, end conv, relu, fused logits|mean|std ----
    h = jnp.maximum(skips, 0.0)
    h = jnp.dot(h, w_ref[END_OFF:END_OFF + SKIP_CH, 0:END_CH],
                preferred_element_type=jnp.float32)
    h = jnp.maximum(h + b_ref[B_END:B_END + 1, 0:END_CH], 0.0)
    head = jnp.dot(h, w_ref[HEAD_OFF:HEAD_OFF + END_CH, 0:3 * MIXTURE],
                   preferred_element_type=jnp.float32)
    head = head + b_ref[B_HEAD:B_HEAD + 1, 0:3 * MIXTURE]                  # (B, 3M)
    # numerically stable softplus on the std third only; logits/mean pass through.
    softplus = jnp.maximum(head, 0.0) + jnp.log(1.0 + jnp.exp(-jnp.abs(head)))
    col = lax.broadcasted_iota(jnp.int32, head.shape, 1)
    out_ref[...] = jnp.where(col < 2 * MIXTURE, head, softplus + EPS)


# ---------------- parameter packing (torch layout -> packed slabs) -------------
def pack_params(raw):
    wp = jnp.zeros((W_ROWS, W_COLS), jnp.float32)
    bp = jnp.zeros((B_ROWS, W_COLS), jnp.float32)

    start_ext = jnp.concatenate(
        [raw["start_w"].T, jnp.eye(RESID_CH, dtype=jnp.float32)], axis=0)
    wp = wp.at[START_OFF:START_OFF + START_ROWS, 0:RESID_CH].set(start_ext)

    for bi in range(N_BLOCKS):
        for si in range(SUB_BLOCKS):
            sub = bi * SUB_BLOCKS + si
            # fused (k*R, 2G): taps stacked on rows, [sig | gate] on cols.
            sg = jnp.concatenate(
                [jnp.concatenate([raw["sig_w"][bi, si, :, :, j].T,
                                  raw["gate_w"][bi, si, :, :, j].T], axis=1)
                 for j in range(KERNELS)], axis=0)
            r0 = SG_OFF + sub * _round8(SG_ROWS)
            wp = wp.at[r0:r0 + SG_ROWS, 0:2 * GATE_CH].set(sg)
            r0 = OUT_OFF + sub * _round8(GATE_CH)
            wp = wp.at[r0:r0 + GATE_CH, 0:RESID_CH].set(raw["out_w"][bi, si].T)
            bp = bp.at[B_SG + sub, 0:2 * GATE_CH].set(
                jnp.concatenate([raw["sig_b"][bi, si], raw["gate_b"][bi, si]]))
            bp = bp.at[B_OUT + sub, 0:RESID_CH].set(raw["out_b"][bi, si])

        dil = jnp.concatenate([raw["dil_w"][bi, :, :, 0].T,
                               raw["dil_w"][bi, :, :, 1].T], axis=0)    # (2R, R)
        r0 = DIL_OFF + bi * _round8(DIL_ROWS)
        wp = wp.at[r0:r0 + DIL_ROWS, 0:RESID_CH].set(dil)
        bp = bp.at[B_DIL + bi, 0:RESID_CH].set(raw["dil_b"][bi])
        # per-block skip weights stacked vertically into the fused skip slab.
        r0 = SKIP_OFF + bi * RESID_CH
        wp = wp.at[r0:r0 + RESID_CH, 0:SKIP_CH].set(raw["skip_w"][bi].T)

    # final skip conv is the last chunk of the fused skip slab.
    r0 = SKIP_OFF + N_BLOCKS * RESID_CH
    wp = wp.at[r0:r0 + RESID_CH, 0:SKIP_CH].set(raw["fskip_w"].T)
    wp = wp.at[END_OFF:END_OFF + SKIP_CH, 0:END_CH].set(raw["end_w"].T)
    wp = wp.at[HEAD_OFF:HEAD_OFF + END_CH, 0:3 * MIXTURE].set(
        jnp.concatenate([raw["lw"].T, raw["mw"].T, raw["sw"].T], axis=1))

    bp = bp.at[B_SKIP, 0:SKIP_CH].set(raw["skip_b"].sum(axis=0) + raw["fskip_b"])
    bp = bp.at[B_END, 0:END_CH].set(raw["end_b"])
    bp = bp.at[B_HEAD, 0:3 * MIXTURE].set(
        jnp.concatenate([raw["lb"], raw["mb"], raw["sb"]]))
    return wp, bp


# ---------------- wrapper -------------------------------------------------------
def wavenet_forward(x_seq, emb_add, raw):
    """x_seq: (B, T, n_seq) float; emb_add: (B, T, R) float (already gathered)."""
    b, t, n_seq = x_seq.shape
    assert n_seq == N_SEQ and t == HISTORY_DAYS and emb_add.shape == (b, t, RESID_CH)

    w_pack, b_pack = pack_params(raw)
    # batch folded into rows (b-major): row = b*T + t; start-conv bias folded in.
    x_in = jnp.concatenate(
        [x_seq.reshape(b * t, n_seq).astype(jnp.float32),
         (emb_add + raw["start_b"][None, None, :]).reshape(b * t, RESID_CH)],
        axis=-1)

    out = pl.pallas_call(
        wavenet_kernel,
        out_shape=jax.ShapeDtypeStruct((b, 3 * MIXTURE), jnp.float32),
        grid_spec=pltpu.PrefetchScalarGridSpec(
            num_scalar_prefetch=0,
            grid=(1,),                         # whole forward in one grid step
            in_specs=[
                pl.BlockSpec((b * t, n_seq + RESID_CH), lambda i: (0, 0)),
                pl.BlockSpec((W_ROWS, W_COLS), lambda i: (0, 0)),
                pl.BlockSpec((B_ROWS, W_COLS), lambda i: (0, 0)),
            ],
            out_specs=pl.BlockSpec((b, 3 * MIXTURE), lambda i: (0, 0)),
            scratch_shapes=[pltpu.VMEM((PAD + b * t, RESID_CH), jnp.float32)],
        ),
        compiler_params=pltpu.CompilerParams(dimension_semantics=("arbitrary",)),
    )(x_in, w_pack, b_pack)

    logits = out[:, None, 0:MIXTURE]
    mean = out[:, None, MIXTURE:2 * MIXTURE]
    std = out[:, None, 2 * MIXTURE:3 * MIXTURE]
    return logits, mean, std


# ---------------- deterministic parameter init (torch layout) ------------------
def init_params(key):
    keys = iter(jax.random.split(key, 32))

    def w(shape, scale=0.1):
        return scale * jax.random.normal(next(keys), shape, jnp.float32)

    raw = dict(
        start_w=w((RESID_CH, N_SEQ)),                       # Conv1d k=1 (O, I)
        start_b=w((RESID_CH,)),
        sig_w=w((N_BLOCKS, SUB_BLOCKS, GATE_CH, RESID_CH, KERNELS)),   # (O, I, k)
        sig_b=w((N_BLOCKS, SUB_BLOCKS, GATE_CH)),
        gate_w=w((N_BLOCKS, SUB_BLOCKS, GATE_CH, RESID_CH, KERNELS)),
        gate_b=w((N_BLOCKS, SUB_BLOCKS, GATE_CH)),
        out_w=w((N_BLOCKS, SUB_BLOCKS, RESID_CH, GATE_CH)),
        out_b=w((N_BLOCKS, SUB_BLOCKS, RESID_CH)),
        skip_w=w((N_BLOCKS, SKIP_CH, RESID_CH)),
        skip_b=w((N_BLOCKS, SKIP_CH)),
        dil_w=w((N_BLOCKS, RESID_CH, RESID_CH, 2)),
        dil_b=w((N_BLOCKS, RESID_CH)),
        fskip_w=w((SKIP_CH, RESID_CH)),
        fskip_b=w((SKIP_CH,)),
        end_w=w((END_CH, SKIP_CH)),
        end_b=w((END_CH,)),
        lw=w((MIXTURE, END_CH)), lb=w((MIXTURE,)),
        mw=w((MIXTURE, END_CH)), mb=w((MIXTURE,)),
        sw=w((MIXTURE, END_CH)), sb=w((MIXTURE,)),
    )
    emb_seq_table = w((EMB_SEQ_SIZE, RESID_CH))
    emb_table = w((EMB_SIZE, RESID_CH))
    return raw, emb_seq_table, emb_table


# ---------------- main -----------------------------------------------------------
if __name__ == "__main__":
    key = jax.random.PRNGKey(0)
    kp, kd = jax.random.split(key)
    raw, emb_seq_table, emb_table = init_params(kp)

    k1, k2, k3 = jax.random.split(kd, 3)
    # batch dict equivalents: N_SEQ SEQUENCE features (B, T) floats,
    # one EMBEDDING_SEQUENCE feature (B, T) ints, one EMBEDDING feature (B,) ints.
    seqs = [jax.random.normal(jax.random.fold_in(k1, i), (BATCH, HISTORY_DAYS), jnp.float32)
            for i in range(N_SEQ)]
    emb_seq_idx = jax.random.randint(k2, (BATCH, HISTORY_DAYS), 0, EMB_SEQ_SIZE)
    emb_idx = jax.random.randint(k3, (BATCH,), 0, EMB_SIZE)

    # glue kept in plain JAX: feature stacking and embedding gathers.
    x_seq = jnp.stack(seqs, axis=-1)                                       # (B, T, n_seq)
    emb_add = emb_seq_table[emb_seq_idx] + emb_table[emb_idx][:, None, :]  # (B, T, R)

    fwd = jax.jit(wavenet_forward)
    logits, mean, std = jax.block_until_ready(fwd(x_seq, emb_add, raw))

    assert logits.shape == (BATCH, 1, MIXTURE), logits.shape
    assert mean.shape == (BATCH, 1, MIXTURE), mean.shape
    assert std.shape == (BATCH, 1, MIXTURE), std.shape
    assert bool(jnp.all(std > 0.0))
    assert bool(jnp.all(jnp.isfinite(logits))) and bool(jnp.all(jnp.isfinite(mean)))
    assert bool(jnp.all(jnp.isfinite(std)))
    print("KERNEL_OK")
</pallas_src>

<mosaic_0001>
module attributes {stable_mosaic.version = 11 : i64} {
  func.func @wavenet_kernel(%arg0: i32, %arg1: memref<16x10xf32, #tpu.memory_space<vmem>>, %arg2: memref<256x16xf32, #tpu.memory_space<vmem>>, %arg3: memref<24x16xf32, #tpu.memory_space<vmem>>, %arg4: memref<2x12xf32, #tpu.memory_space<vmem>>, %arg5: memref<24x8xf32, #tpu.memory_space<vmem>>) attributes {dimension_semantics = [#tpu.dimension_semantics<arbitrary>], iteration_bounds = array<i64: 1>, scalar_prefetch = 0 : i64, scratch_operands = 1 : i64, tpu.core_type = #tpu.core_type<tc>, window_params = [{pipeline_mode = #tpu.pipeline_mode<synchronous>, transform_indices = @transform_0, window_bounds = array<i64: 16, 10>}, {pipeline_mode = #tpu.pipeline_mode<synchronous>, transform_indices = @transform_1, window_bounds = array<i64: 256, 16>}, {pipeline_mode = #tpu.pipeline_mode<synchronous>, transform_indices = @transform_2, window_bounds = array<i64: 24, 16>}, {pipeline_mode = #tpu.pipeline_mode<synchronous>, transform_indices = @transform_3, window_bounds = array<i64: 2, 12>}]} {
    %cst = arith.constant 0.000000e+00 : f32
    %0 = vector.broadcast %cst : f32 to vector<8x8xf32>
    %c0 = arith.constant 0 : index
    %c0_0 = arith.constant 0 : index
    %1 = vector.load %arg5[%c0, %c0_0] : memref<24x8xf32, #tpu.memory_space<vmem>>, vector<8x8xf32>
    tpu.vector_store %arg5[%c0, %c0_0], %0 {strides = array<i32>} : memref<24x8xf32, #tpu.memory_space<vmem>>, vector<8x8xf32>,
    %c0_1 = arith.constant 0 : index
    %c0_2 = arith.constant 0 : index
    %2 = vector.load %arg1[%c0_1, %c0_2] : memref<16x10xf32, #tpu.memory_space<vmem>>, vector<16x10xf32>
    %c0_3 = arith.constant 0 : index
    %c0_4 = arith.constant 0 : index
    %3 = vector.load %arg2[%c0_3, %c0_4] : memref<256x16xf32, #tpu.memory_space<vmem>>, vector<10x8xf32>
    %cst_5 = arith.constant dense<0.000000e+00> : vector<16x8xf32>
    %4 = tpu.matmul %2, %3, %cst_5 {dimension_numbers = #tpu.dot_dimension_numbers<[1], [0], [0], [1], [0, 0, 1, 1], [], []>} : vector<16x10xf32>, vector<10x8xf32>, vector<16x8xf32> -> vector<16x8xf32>
    %5 = tpu.iota {dimensions = array<i32: 0>} : vector<16x1xi32>
    %c7_i32 = arith.constant 7 : i32
    %6 = vector.broadcast %c7_i32 : i32 to vector<16x1xi32>
    %7 = arith.andi %5, %6 : vector<16x1xi32>
    %c1_i32 = arith.constant 1 : i32
    %8 = vector.broadcast %c1_i32 : i32 to vector<16x1xi32>
    %9 = arith.cmpi sge, %7, %8 : vector<16x1xi32>
    %c8 = arith.constant 8 : index
    %c0_6 = arith.constant 0 : index
    %10 = vector.load %arg5[%c8, %c0_6] : memref<24x8xf32, #tpu.memory_space<vmem>>, vector<16x8xf32>
    tpu.vector_store %arg5[%c8, %c0_6], %4 {strides = array<i32>} : memref<24x8xf32, #tpu.memory_space<vmem>>, vector<16x8xf32>,
    %c7 = arith.constant 7 : index
    %c0_7 = arith.constant 0 : index
    %11 = vector.load %arg5[%c7, %c0_7] : memref<24x8xf32, #tpu.memory_space<vmem>>, vector<16x8xf32>
    %cst_8 = arith.constant 0.000000e+00 : f32
    %12 = vector.shape_cast %9 : vector<16x1xi1> to vector<16x1xi1>
    %13 = vector.broadcast %12 : vector<16x1xi1> to vector<16x8xi1>
    %14 = vector.broadcast %cst_8 : f32 to vector<16x8xf32>
    %15 = arith.select %13, %11, %14 : vector<16x8xi1>, vector<16x8xf32>
    %16 = tpu.concatenate %15, %4 in 1 : vector<16x8xf32>, vector<16x8xf32> -> vector<16x16xf32>
    %c16 = arith.constant 16 : index
    %c0_9 = arith.constant 0 : index
    %17 = vector.load %arg2[%c16, %c0_9] : memref<256x16xf32, #tpu.memory_space<vmem>>, vector<16x16xf32>
    %cst_10 = arith.constant dense<0.000000e+00> : vector<16x16xf32>
    %18 = tpu.matmul %16, %17, %cst_10 {dimension_numbers = #tpu.dot_dimension_numbers<[1], [0], [0], [1], [0, 0, 1, 1], [], []>} : vector<16x16xf32>, vector<16x16xf32>, vector<16x16xf32> -> vector<16x16xf32>
    %c0_11 = arith.constant 0 : index
    %c0_12 = arith.constant 0 : index
    %19 = vector.load %arg3[%c0_11, %c0_12] : memref<24x16xf32, #tpu.memory_space<vmem>>, vector<1x16xf32>
    %20 = vector.broadcast %19 : vector<1x16xf32> to vector<16x16xf32>
    %21 = arith.addf %18, %20 : vector<16x16xf32>
    %22 = vector.extract_strided_slice %21 {offsets = [0, 0], sizes = [16, 8], strides = [1, 1]} : vector<16x16xf32> to vector<16x8xf32>
    %cst_13 = arith.constant 0.000000e+00 : f32
    %23 = vector.broadcast %cst_13 : f32 to vector<16x8xf32>
    %24 = arith.maximumf %22, %23 : vector<16x8xf32>
    %25 = vector.extract_strided_slice %21 {offsets = [0, 8], sizes = [16, 8], strides = [1, 1]} : vector<16x16xf32> to vector<16x8xf32>
    %cst_14 = arith.constant 0.000000e+00 : f32
    %26 = vector.broadcast %cst_14 : f32 to vector<16x8xf32>
    %27 = arith.subf %26, %25 : vector<16x8xf32>
    %28 = math.exp %27 : vector<16x8xf32>
    %cst_15 = arith.constant 1.000000e+00 : f32
    %29 = vector.broadcast %cst_15 : f32 to vector<16x8xf32>
    %30 = arith.addf %29, %28 : vector<16x8xf32>
    %31 = tpu.reciprocal %30 {approx = true} : vector<16x8xf32> -> vector<16x8xf32>
    %32 = arith.mulf %24, %31 : vector<16x8xf32>
    %c112 = arith.constant 112 : index
    %c0_16 = arith.constant 0 : index
    %33 = vector.load %arg2[%c112, %c0_16] : memref<256x16xf32, #tpu.memory_space<vmem>>, vector<8x8xf32>
    %cst_17 = arith.constant dense<0.000000e+00> : vector<16x8xf32>
    %34 = tpu.matmul %32, %33, %cst_17 {dimension_numbers = #tpu.dot_dimension_numbers<[1], [0], [0], [1], [0, 0, 1, 1], [], []>} : vector<16x8xf32>, vector<8x8xf32>, vector<16x8xf32> -> vector<16x8xf32>
    %c6 = arith.constant 6 : index
    %c0_18 = arith.constant 0 : index
    %35 = vector.load %arg3[%c6, %c0_18] : memref<24x16xf32, #tpu.memory_space<vmem>>, vector<1x8xf32>
    %36 = vector.broadcast %35 : vector<1x8xf32> to vector<16x8xf32>
    %37 = arith.addf %34, %36 : vector<16x8xf32>
    %38 = arith.addf %37, %4 : vector<16x8xf32>
    %c8_19 = arith.constant 8 : index
    %c0_20 = arith.constant 0 : index
    %39 = vector.load %arg5[%c8_19, %c0_20] : memref<24x8xf32, #tpu.memory_space<vmem>>, vector<16x8xf32>
    tpu.vector_store %arg5[%c8_19, %c0_20], %38 {strides = array<i32>} : memref<24x8xf32, #tpu.memory_space<vmem>>, vector<16x8xf32>,
    %c7_21 = arith.constant 7 : index
    %c0_22 = arith.constant 0 : index
    %40 = vector.load %arg5[%c7_21, %c0_22] : memref<24x8xf32, #tpu.memory_space<vmem>>, vector<16x8xf32>
    %cst_23 = arith.constant 0.000000e+00 : f32
    %41 = vector.shape_cast %9 : vector<16x1xi1> to vector<16x1xi1>
    %42 = vector.broadcast %41 : vector<16x1xi1> to vector<16x8xi1>
    %43 = vector.broadcast %cst_23 : f32 to vector<16x8xf32>
    %44 = arith.select %42, %40, %43 : vector<16x8xi1>, vector<16x8xf32>
    %45 = tpu.concatenate %44, %38 in 1 : vector<16x8xf32>, vector<16x8xf32> -> vector<16x16xf32>
    %c32 = arith.constant 32 : index
    %c0_24 = arith.constant 0 : index
    %46 = vector.load %arg2[%c32, %c0_24] : memref<256x16xf32, #tpu.memory_space<vmem>>, vector<16x16xf32>
    %cst_25 = arith.constant dense<0.000000e+00> : vector<16x16xf32>
    %47 = tpu.matmul %45, %46, %cst_25 {dimension_numbers = #tpu.dot_dimension_numbers<[1], [0], [0], [1], [0, 0, 1, 1], [], []>} : vector<16x16xf32>, vector<16x16xf32>, vector<16x16xf32> -> vector<16x16xf32>
    %c1 = arith.constant 1 : index
    %c0_26 = arith.constant 0 : index
    %48 = vector.load %arg3[%c1, %c0_26] : memref<24x16xf32, #tpu.memory_space<vmem>>, vector<1x16xf32>
    %49 = vector.broadcast %48 : vector<1x16xf32> to vector<16x16xf32>
    %50 = arith.addf %47, %49 : vector<16x16xf32>
    %51 = vector.extract_strided_slice %50 {offsets = [0, 0], sizes = [16, 8], strides = [1, 1]} : vector<16x16xf32> to vector<16x8xf32>
    %cst_27 = arith.constant 0.000000e+00 : f32
    %52 = vector.broadcast %cst_27 : f32 to vector<16x8xf32>
    %53 = arith.maximumf %51, %52 : vector<16x8xf32>
    %54 = vector.extract_strided_slice %50 {offsets = [0, 8], sizes = [16, 8], strides = [1, 1]} : vector<16x16xf32> to vector<16x8xf32>
    %cst_28 = arith.constant 0.000000e+00 : f32
    %55 = vector.broadcast %cst_28 : f32 to vector<16x8xf32>
    %56 = arith.subf %55, %54 : vector<16x8xf32>
    %57 = math.exp %56 : vector<16x8xf32>
    %cst_29 = arith.constant 1.000000e+00 : f32
    %58 = vector.broadcast %cst_29 : f32 to vector<16x8xf32>
    %59 = arith.addf %58, %57 : vector<16x8xf32>
    %60 = tpu.reciprocal %59 {approx = true} : vector<16x8xf32> -> vector<16x8xf32>
    %61 = arith.mulf %53, %60 : vector<16x8xf32>
    %c120 = arith.constant 120 : index
    %c0_30 = arith.constant 0 : index
    %62 = vector.load %arg2[%c120, %c0_30] : memref<256x16xf32, #tpu.memory_space<vmem>>, vector<8x8xf32>
    %cst_31 = arith.constant dense<0.000000e+00> : vector<16x8xf32>
    %63 = tpu.matmul %61, %62, %cst_31 {dimension_numbers = #tpu.dot_dimension_numbers<[1], [0], [0], [1], [0, 0, 1, 1], [], []>} : vector<16x8xf32>, vector<8x8xf32>, vector<16x8xf32> -> vector<16x8xf32>
    %c7_32 = arith.constant 7 : index
    %c0_33 = arith.constant 0 : index
    %64 = vector.load %arg3[%c7_32, %c0_33] : memref<24x16xf32, #tpu.memory_space<vmem>>, vector<1x8xf32>
    %65 = vector.broadcast %64 : vector<1x8xf32> to vector<16x8xf32>
    %66 = arith.addf %63, %65 : vector<16x8xf32>
    %67 = arith.addf %66, %38 : vector<16x8xf32>
    %c8_34 = arith.constant 8 : index
    %c0_35 = arith.constant 0 : index
    %68 = vector.load %arg5[%c8_34, %c0_35] : memref<24x8xf32, #tpu.memory_space<vmem>>, vector<16x8xf32>
    tpu.vector_store %arg5[%c8_34, %c0_35], %67 {strides = array<i32>} : memref<24x8xf32, #tpu.memory_space<vmem>>, vector<16x8xf32>,
    %c15 = arith.constant 15 : index
    %c0_36 = arith.constant 0 : index
    %69 = tpu.strided_load %arg5[%c15, %c0_36] {strides = array<i32: 8, 1>} : memref<24x8xf32, #tpu.memory_space<vmem>>, vector<2x8xf32>
    %70 = tpu.iota {dimensions = array<i32: 0>} : vector<8x1xi32>
    %c3_i32 = arith.constant 3 : i32
    %71 = vector.broadcast %c3_i32 : i32 to vector<8x1xi32>
    %72 = arith.andi %70, %71 : vector<8x1xi32>
    %c1_i32_37 = arith.constant 1 : i32
    %73 = vector.broadcast %c1_i32_37 : i32 to vector<8x1xi32>
    %74 = arith.cmpi sge, %72, %73 : vector<8x1xi32>
    %c8_38 = arith.constant 8 : index
    %c0_39 = arith.constant 0 : index
    %75 = tpu.strided_load %arg5[%c8_38, %c0_39] {strides = array<i32: 2, 1>} : memref<24x8xf32, #tpu.memory_space<vmem>>, vector<8x8xf32>
    %c7_40 = arith.constant 7 : index
    %c0_41 = arith.constant 0 : index
    %76 = tpu.strided_load %arg5[%c7_40, %c0_41] {strides = array<i32: 2, 1>} : memref<24x8xf32, #tpu.memory_space<vmem>>, vector<8x8xf32>
    %cst_42 = arith.constant 0.000000e+00 : f32
    %77 = vector.shape_cast %74 : vector<8x1xi1> to vector<8x1xi1>
    %78 = vector.broadcast %77 : vector<8x1xi1> to vector<8x8xi1>
    %79 = vector.broadcast %cst_42 : f32 to vector<8x8xf32>
    %80 = arith.select %78, %76, %79 : vector<8x8xi1>, vector<8x8xf32>
    %81 = tpu.concatenate %80, %75 in 1 : vector<8x8xf32>, vector<8x8xf32> -> vector<8x16xf32>
    %c160 = arith.constant 160 : index
    %c0_43 = arith.constant 0 : index
    %82 = vector.load %arg2[%c160, %c0_43] : memref<256x16xf32, #tpu.memory_space<vmem>>, vector<16x8xf32>
    %cst_44 = arith.constant dense<0.000000e+00> : vector<8x8xf32>
    %83 = tpu.matmul %81, %82, %cst_44 {dimension_numbers = #tpu.dot_dimension_numbers<[1], [0], [0], [1], [0, 0, 1, 1], [], []>} : vector<8x16xf32>, vector<16x8xf32>, vector<8x8xf32> -> vector<8x8xf32>
    %c12 = arith.constant 12 : index
    %c0_45 = arith.constant 0 : index
    %84 = vector.load %arg3[%c12, %c0_45] : memref<24x16xf32, #tpu.memory_space<vmem>>, vector<1x8xf32>
    %85 = vector.broadcast %84 : vector<1x8xf32> to vector<8x8xf32>
    %86 = arith.addf %83, %85 : vector<8x8xf32>
    %87 = tpu.iota {dimensions = array<i32: 0>} : vector<8x1xi32>
    %c3_i32_46 = arith.constant 3 : i32
    %88 = vector.broadcast %c3_i32_46 : i32 to vector<8x1xi32>
    %89 = arith.andi %87, %88 : vector<8x1xi32>
    %c1_i32_47 = arith.constant 1 : i32
    %90 = vector.broadcast %c1_i32_47 : i32 to vector<8x1xi32>
    %91 = arith.cmpi sge, %89, %90 : vector<8x1xi32>
    %c8_48 = arith.constant 8 : index
    %c0_49 = arith.constant 0 : index
    %92 = vector.load %arg5[%c8_48, %c0_49] : memref<24x8xf32, #tpu.memory_space<vmem>>, vector<8x8xf32>
    tpu.vector_store %arg5[%c8_48, %c0_49], %86 {strides = array<i32>} : memref<24x8xf32, #tpu.memory_space<vmem>>, vector<8x8xf32>,
    %c7_50 = arith.constant 7 : index
    %c0_51 = arith.constant 0 : index
    %93 = vector.load %arg5[%c7_50, %c0_51] : memref<24x8xf32, #tpu.memory_space<vmem>>, vector<8x8xf32>
    %cst_52 = arith.constant 0.000000e+00 : f32
    %94 = vector.shape_cast %91 : vector<8x1xi1> to vector<8x1xi1>
    %95 = vector.broadcast %94 : vector<8x1xi1> to vector<8x8xi1>
    %96 = vector.broadcast %cst_52 : f32 to vector<8x8xf32>
    %97 = arith.select %95, %93, %96 : vector<8x8xi1>, vector<8x8xf32>
    %98 = tpu.concatenate %97, %86 in 1 : vector<8x8xf32>, vector<8x8xf32> -> vector<8x16xf32>
    %c48 = arith.constant 48 : index
    %c0_53 = arith.constant 0 : index
    %99 = vector.load %arg2[%c48, %c0_53] : memref<256x16xf32, #tpu.memory_space<vmem>>, vector<16x16xf32>
    %cst_54 = arith.constant dense<0.000000e+00> : vector<8x16xf32>
    %100 = tpu.matmul %98, %99, %cst_54 {dimension_numbers = #tpu.dot_dimension_numbers<[1], [0], [0], [1], [0, 0, 1, 1], [], []>} : vector<8x16xf32>, vector<16x16xf32>, vector<8x16xf32> -> vector<8x16xf32>
    %c2 = arith.constant 2 : index
    %c0_55 = arith.constant 0 : index
    %101 = vector.load %arg3[%c2, %c0_55] : memref<24x16xf32, #tpu.memory_space<vmem>>, vector<1x16xf32>
    %102 = vector.broadcast %101 : vector<1x16xf32> to vector<8x16xf32>
    %103 = arith.addf %100, %102 : vector<8x16xf32>
    %104 = vector.extract_strided_slice %103 {offsets = [0, 0], sizes = [8, 8], strides = [1, 1]} : vector<8x16xf32> to vector<8x8xf32>
    %cst_56 = arith.constant 0.000000e+00 : f32
    %105 = vector.broadcast %cst_56 : f32 to vector<8x8xf32>
    %106 = arith.maximumf %104, %105 : vector<8x8xf32>
    %107 = vector.extract_strided_slice %103 {offsets = [0, 8], sizes = [8, 8], strides = [1, 1]} : vector<8x16xf32> to vector<8x8xf32>
    %cst_57 = arith.constant 0.000000e+00 : f32
    %108 = vector.broadcast %cst_57 : f32 to vector<8x8xf32>
    %109 = arith.subf %108, %107 : vector<8x8xf32>
    %110 = math.exp %109 : vector<8x8xf32>
    %cst_58 = arith.constant 1.000000e+00 : f32
    %111 = vector.broadcast %cst_58 : f32 to vector<8x8xf32>
    %112 = arith.addf %111, %110 : vector<8x8xf32>
    %113 = tpu.reciprocal %112 {approx = true} : vector<8x8xf32> -> vector<8x8xf32>
    %114 = arith.mulf %106, %113 : vector<8x8xf32>
    %c128 = arith.constant 128 : index
    %c0_59 = arith.constant 0 : index
    %115 = vector.load %arg2[%c128, %c0_59] : memref<256x16xf32, #tpu.memory_space<vmem>>, vector<8x8xf32>
    %cst_60 = arith.constant dense<0.000000e+00> : vector<8x8xf32>
    %116 = tpu.matmul %114, %115, %cst_60 {dimension_numbers = #tpu.dot_dimension_numbers<[1], [0], [0], [1], [0, 0, 1, 1], [], []>} : vector<8x8xf32>, vector<8x8xf32>, vector<8x8xf32> -> vector<8x8xf32>
    %c8_61 = arith.constant 8 : index
    %c0_62 = arith.constant 0 : index
    %117 = vector.load %arg3[%c8_61, %c0_62] : memref<24x16xf32, #tpu.memory_space<vmem>>, vector<1x8xf32>
    %118 = vector.broadcast %117 : vector<1x8xf32> to vector<8x8xf32>
    %119 = arith.addf %116, %118 : vector<8x8xf32>
    %120 = arith.addf %119, %86 : vector<8x8xf32>
    %c8_63 = arith.constant 8 : index
    %c0_64 = arith.constant 0 : index
    %121 = vector.load %arg5[%c8_63, %c0_64] : memref<24x8xf32, #tpu.memory_space<vmem>>, vector<8x8xf32>
    tpu.vector_store %arg5[%c8_63, %c0_64], %120 {strides = array<i32>} : memref<24x8xf32, #tpu.memory_space<vmem>>, vector<8x8xf32>,
    %c7_65 = arith.constant 7 : index
    %c0_66 = arith.constant 0 : index
    %122 = vector.load %arg5[%c7_65, %c0_66] : memref<24x8xf32, #tpu.memory_space<vmem>>, vector<8x8xf32>
    %cst_67 = arith.constant 0.000000e+00 : f32
    %123 = vector.shape_cast %91 : vector<8x1xi1> to vector<8x1xi1>
    %124 = vector.broadcast %123 : vector<8x1xi1> to vector<8x8xi1>
    %125 = vector.broadcast %cst_67 : f32 to vector<8x8xf32>
    %126 = arith.select %124, %122, %125 : vector<8x8xi1>, vector<8x8xf32>
    %127 = tpu.concatenate %126, %120 in 1 : vector<8x8xf32>, vector<8x8xf32> -> vector<8x16xf32>
    %c64 = arith.constant 64 : index
    %c0_68 = arith.constant 0 : index
    %128 = vector.load %arg2[%c64, %c0_68] : memref<256x16xf32, #tpu.memory_space<vmem>>, vector<16x16xf32>
    %cst_69 = arith.constant dense<0.000000e+00> : vector<8x16xf32>
    %129 = tpu.matmul %127, %128, %cst_69 {dimension_numbers = #tpu.dot_dimension_numbers<[1], [0], [0], [1], [0, 0, 1, 1], [], []>} : vector<8x16xf32>, vector<16x16xf32>, vector<8x16xf32> -> vector<8x16xf32>
    %c3 = arith.constant 3 : index
    %c0_70 = arith.constant 0 : index
    %130 = vector.load %arg3[%c3, %c0_70] : memref<24x16xf32, #tpu.memory_space<vmem>>, vector<1x16xf32>
    %131 = vector.broadcast %130 : vector<1x16xf32> to vector<8x16xf32>
    %132 = arith.addf %129, %131 : vector<8x16xf32>
    %133 = vector.extract_strided_slice %132 {offsets = [0, 0], sizes = [8, 8], strides = [1, 1]} : vector<8x16xf32> to vector<8x8xf32>
    %cst_71 = arith.constant 0.000000e+00 : f32
    %134 = vector.broadcast %cst_71 : f32 to vector<8x8xf32>
    %135 = arith.maximumf %133, %134 : vector<8x8xf32>
    %136 = vector.extract_strided_slice %132 {offsets = [0, 8], sizes = [8, 8], strides = [1, 1]} : vector<8x16xf32> to vector<8x8xf32>
    %cst_72 = arith.constant 0.000000e+00 : f32
    %137 = vector.broadcast %cst_72 : f32 to vector<8x8xf32>
    %138 = arith.subf %137, %136 : vector<8x8xf32>
    %139 = math.exp %138 : vector<8x8xf32>
    %cst_73 = arith.constant 1.000000e+00 : f32
    %140 = vector.broadcast %cst_73 : f32 to vector<8x8xf32>
    %141 = arith.addf %140, %139 : vector<8x8xf32>
    %142 = tpu.reciprocal %141 {approx = true} : vector<8x8xf32> -> vector<8x8xf32>
    %143 = arith.mulf %135, %142 : vector<8x8xf32>
    %c136 = arith.constant 136 : index
    %c0_74 = arith.constant 0 : index
    %144 = vector.load %arg2[%c136, %c0_74] : memref<256x16xf32, #tpu.memory_space<vmem>>, vector<8x8xf32>
    %cst_75 = arith.constant dense<0.000000e+00> : vector<8x8xf32>
    %145 = tpu.matmul %143, %144, %cst_75 {dimension_numbers = #tpu.dot_dimension_numbers<[1], [0], [0], [1], [0, 0, 1, 1], [], []>} : vector<8x8xf32>, vector<8x8xf32>, vector<8x8xf32> -> vector<8x8xf32>
    %c9 = arith.constant 9 : index
    %c0_76 = arith.constant 0 : index
    %146 = vector.load %arg3[%c9, %c0_76] : memref<24x16xf32, #tpu.memory_space<vmem>>, vector<1x8xf32>
    %147 = vector.broadcast %146 : vector<1x8xf32> to vector<8x8xf32>
    %148 = arith.addf %145, %147 : vector<8x8xf32>
    %149 = arith.addf %148, %120 : vector<8x8xf32>
    %c8_77 = arith.constant 8 : index
    %c0_78 = arith.constant 0 : index
    %150 = vector.load %arg5[%c8_77, %c0_78] : memref<24x8xf32, #tpu.memory_space<vmem>>, vector<8x8xf32>
    tpu.vector_store %arg5[%c8_77, %c0_78], %149 {strides = array<i32>} : memref<24x8xf32, #tpu.memory_space<vmem>>, vector<8x8xf32>,
    %c11 = arith.constant 11 : index
    %c0_79 = arith.constant 0 : index
    %151 = tpu.strided_load %arg5[%c11, %c0_79] {strides = array<i32: 4, 1>} : memref<24x8xf32, #tpu.memory_space<vmem>>, vector<2x8xf32>
    %152 = tpu.iota {dimensions = array<i32: 0>} : vector<4x1xi32>
    %c1_i32_80 = arith.constant 1 : i32
    %153 = vector.broadcast %c1_i32_80 : i32 to vector<4x1xi32>
    %154 = arith.andi %152, %153 : vector<4x1xi32>
    %c1_i32_81 = arith.constant 1 : i32
    %155 = vector.broadcast %c1_i32_81 : i32 to vector<4x1xi32>
    %156 = arith.cmpi sge, %154, %155 : vector<4x1xi32>
    %c8_82 = arith.constant 8 : index
    %c0_83 = arith.constant 0 : index
    %157 = tpu.strided_load %arg5[%c8_82, %c0_83] {strides = array<i32: 2, 1>} : memref<24x8xf32, #tpu.memory_space<vmem>>, vector<4x8xf32>
    %c7_84 = arith.constant 7 : index
    %c0_85 = arith.constant 0 : index
    %158 = tpu.strided_load %arg5[%c7_84, %c0_85] {strides = array<i32: 2, 1>} : memref<24x8xf32, #tpu.memory_space<vmem>>, vector<4x8xf32>
    %cst_86 = arith.constant 0.000000e+00 : f32
    %159 = vector.shape_cast %156 : vector<4x1xi1> to vector<4x1xi1>
    %160 = vector.broadcast %159 : vector<4x1xi1> to vector<4x8xi1>
    %161 = vector.broadcast %cst_86 : f32 to vector<4x8xf32>
    %162 = arith.select %160, %158, %161 : vector<4x8xi1>, vector<4x8xf32>
    %163 = tpu.concatenate %162, %157 in 1 : vector<4x8xf32>, vector<4x8xf32> -> vector<4x16xf32>
    %c176 = arith.constant 176 : index
    %c0_87 = arith.constant 0 : index
    %164 = vector.load %arg2[%c176, %c0_87] : memref<256x16xf32, #tpu.memory_space<vmem>>, vector<16x8xf32>
    %cst_88 = arith.constant dense<0.000000e+00> : vector<4x8xf32>
    %165 = tpu.matmul %163, %164, %cst_88 {dimension_numbers = #tpu.dot_dimension_numbers<[1], [0], [0], [1], [0, 0, 1, 1], [], []>} : vector<4x16xf32>, vector<16x8xf32>, vector<4x8xf32> -> vector<4x8xf32>
    %c13 = arith.constant 13 : index
    %c0_89 = arith.constant 0 : index
    %166 = vector.load %arg3[%c13, %c0_89] : memref<24x16xf32, #tpu.memory_space<vmem>>, vector<1x8xf32>
    %167 = vector.broadcast %166 : vector<1x8xf32> to vector<4x8xf32>
    %168 = arith.addf %165, %167 : vector<4x8xf32>
    %169 = tpu.iota {dimensions = array<i32: 0>} : vector<4x1xi32>
    %c1_i32_90 = arith.constant 1 : i32
    %170 = vector.broadcast %c1_i32_90 : i32 to vector<4x1xi32>
    %171 = arith.andi %169, %170 : vector<4x1xi32>
    %c1_i32_91 = arith.constant 1 : i32
    %172 = vector.broadcast %c1_i32_91 : i32 to vector<4x1xi32>
    %173 = arith.cmpi sge, %171, %172 : vector<4x1xi32>
    %c8_92 = arith.constant 8 : index
    %c0_93 = arith.constant 0 : index
    %174 = vector.load %arg5[%c8_92, %c0_93] : memref<24x8xf32, #tpu.memory_space<vmem>>, vector<4x8xf32>
    tpu.vector_store %arg5[%c8_92, %c0_93], %168 {strides = array<i32>} : memref<24x8xf32, #tpu.memory_space<vmem>>, vector<4x8xf32>,
    %c7_94 = arith.constant 7 : index
    %c0_95 = arith.constant 0 : index
    %175 = vector.load %arg5[%c7_94, %c0_95] : memref<24x8xf32, #tpu.memory_space<vmem>>, vector<4x8xf32>
    %cst_96 = arith.constant 0.000000e+00 : f32
    %176 = vector.shape_cast %173 : vector<4x1xi1> to vector<4x1xi1>
    %177 = vector.broadcast %176 : vector<4x1xi1> to vector<4x8xi1>
    %178 = vector.broadcast %cst_96 : f32 to vector<4x8xf32>
    %179 = arith.select %177, %175, %178 : vector<4x8xi1>, vector<4x8xf32>
    %180 = tpu.concatenate %179, %168 in 1 : vector<4x8xf32>, vector<4x8xf32> -> vector<4x16xf32>
    %c80 = arith.constant 80 : index
    %c0_97 = arith.constant 0 : index
    %181 = vector.load %arg2[%c80, %c0_97] : memref<256x16xf32, #tpu.memory_space<vmem>>, vector<16x16xf32>
    %cst_98 = arith.constant dense<0.000000e+00> : vector<4x16xf32>
    %182 = tpu.matmul %180, %181, %cst_98 {dimension_numbers = #tpu.dot_dimension_numbers<[1], [0], [0], [1], [0, 0, 1, 1], [], []>} : vector<4x16xf32>, vector<16x16xf32>, vector<4x16xf32> -> vector<4x16xf32>
    %c4 = arith.constant 4 : index
    %c0_99 = arith.constant 0 : index
    %183 = vector.load %arg3[%c4, %c0_99] : memref<24x16xf32, #tpu.memory_space<vmem>>, vector<1x16xf32>
    %184 = vector.broadcast %183 : vector<1x16xf32> to vector<4x16xf32>
    %185 = arith.addf %182, %184 : vector<4x16xf32>
    %186 = vector.extract_strided_slice %185 {offsets = [0, 0], sizes = [4, 8], strides = [1, 1]} : vector<4x16xf32> to vector<4x8xf32>
    %cst_100 = arith.constant 0.000000e+00 : f32
    %187 = vector.broadcast %cst_100 : f32 to vector<4x8xf32>
    %188 = arith.maximumf %186, %187 : vector<4x8xf32>
    %189 = vector.extract_strided_slice %185 {offsets = [0, 8], sizes = [4, 8], strides = [1, 1]} : vector<4x16xf32> to vector<4x8xf32>
    %cst_101 = arith.constant 0.000000e+00 : f32
    %190 = vector.broadcast %cst_101 : f32 to vector<4x8xf32>
    %191 = arith.subf %190, %189 : vector<4x8xf32>
    %192 = math.exp %191 : vector<4x8xf32>
    %cst_102 = arith.constant 1.000000e+00 : f32
    %193 = vector.broadcast %cst_102 : f32 to vector<4x8xf32>
    %194 = arith.addf %193, %192 : vector<4x8xf32>
    %195 = tpu.reciprocal %194 {approx = true} : vector<4x8xf32> -> vector<4x8xf32>
    %196 = arith.mulf %188, %195 : vector<4x8xf32>
    %c144 = arith.constant 144 : index
    %c0_103 = arith.constant 0 : index
    %197 = vector.load %arg2[%c144, %c0_103] : memref<256x16xf32, #tpu.memory_space<vmem>>, vector<8x8xf32>
    %cst_104 = arith.constant dense<0.000000e+00> : vector<4x8xf32>
    %198 = tpu.matmul %196, %197, %cst_104 {dimension_numbers = #tpu.dot_dimension_numbers<[1], [0], [0], [1], [0, 0, 1, 1], [], []>} : vector<4x8xf32>, vector<8x8xf32>, vector<4x8xf32> -> vector<4x8xf32>
    %c10 = arith.constant 10 : index
    %c0_105 = arith.constant 0 : index
    %199 = vector.load %arg3[%c10, %c0_105] : memref<24x16xf32, #tpu.memory_space<vmem>>, vector<1x8xf32>
    %200 = vector.broadcast %199 : vector<1x8xf32> to vector<4x8xf32>
    %201 = arith.addf %198, %200 : vector<4x8xf32>
    %202 = arith.addf %201, %168 : vector<4x8xf32>
    %c8_106 = arith.constant 8 : index
    %c0_107 = arith.constant 0 : index
    %203 = vector.load %arg5[%c8_106, %c0_107] : memref<24x8xf32, #tpu.memory_space<vmem>>, vector<4x8xf32>
    tpu.vector_store %arg5[%c8_106, %c0_107], %202 {strides = array<i32>} : memref<24x8xf32, #tpu.memory_space<vmem>>, vector<4x8xf32>,
    %c7_108 = arith.constant 7 : index
    %c0_109 = arith.constant 0 : index
    %204 = vector.load %arg5[%c7_108, %c0_109] : memref<24x8xf32, #tpu.memory_space<vmem>>, vector<4x8xf32>
    %cst_110 = arith.constant 0.000000e+00 : f32
    %205 = vector.shape_cast %173 : vector<4x1xi1> to vector<4x1xi1>
    %206 = vector.broadcast %205 : vector<4x1xi1> to vector<4x8xi1>
    %207 = vector.broadcast %cst_110 : f32 to vector<4x8xf32>
    %208 = arith.select %206, %204, %207 : vector<4x8xi1>, vector<4x8xf32>
    %209 = tpu.concatenate %208, %202 in 1 : vector<4x8xf32>, vector<4x8xf32> -> vector<4x16xf32>
    %c96 = arith.constant 96 : index
    %c0_111 = arith.constant 0 : index
    %210 = vector.load %arg2[%c96, %c0_111] : memref<256x16xf32, #tpu.memory_space<vmem>>, vector<16x16xf32>
    %cst_112 = arith.constant dense<0.000000e+00> : vector<4x16xf32>
    %211 = tpu.matmul %209, %210, %cst_112 {dimension_numbers = #tpu.dot_dimension_numbers<[1], [0], [0], [1], [0, 0, 1, 1], [], []>} : vector<4x16xf32>, vector<16x16xf32>, vector<4x16xf32> -> vector<4x16xf32>
    %c5 = arith.constant 5 : index
    %c0_113 = arith.constant 0 : index
    %212 = vector.load %arg3[%c5, %c0_113] : memref<24x16xf32, #tpu.memory_space<vmem>>, vector<1x16xf32>
    %213 = vector.broadcast %212 : vector<1x16xf32> to vector<4x16xf32>
    %214 = arith.addf %211, %213 : vector<4x16xf32>
    %215 = vector.extract_strided_slice %214 {offsets = [0, 0], sizes = [4, 8], strides = [1, 1]} : vector<4x16xf32> to vector<4x8xf32>
    %cst_114 = arith.constant 0.000000e+00 : f32
    %216 = vector.broadcast %cst_114 : f32 to vector<4x8xf32>
    %217 = arith.maximumf %215, %216 : vector<4x8xf32>
    %218 = vector.extract_strided_slice %214 {offsets = [0, 8], sizes = [4, 8], strides = [1, 1]} : vector<4x16xf32> to vector<4x8xf32>
    %cst_115 = arith.constant 0.000000e+00 : f32
    %219 = vector.broadcast %cst_115 : f32 to vector<4x8xf32>
    %220 = arith.subf %219, %218 : vector<4x8xf32>
    %221 = math.exp %220 : vector<4x8xf32>
    %cst_116 = arith.constant 1.000000e+00 : f32
    %222 = vector.broadcast %cst_116 : f32 to vector<4x8xf32>
    %223 = arith.addf %222, %221 : vector<4x8xf32>
    %224 = tpu.reciprocal %223 {approx = true} : vector<4x8xf32> -> vector<4x8xf32>
    %225 = arith.mulf %217, %224 : vector<4x8xf32>
    %c152 = arith.constant 152 : index
    %c0_117 = arith.constant 0 : index
    %226 = vector.load %arg2[%c152, %c0_117] : memref<256x16xf32, #tpu.memory_space<vmem>>, vector<8x8xf32>
    %cst_118 = arith.constant dense<0.000000e+00> : vector<4x8xf32>
    %227 = tpu.matmul %225, %226, %cst_118 {dimension_numbers = #tpu.dot_dimension_numbers<[1], [0], [0], [1], [0, 0, 1, 1], [], []>} : vector<4x8xf32>, vector<8x8xf32>, vector<4x8xf32> -> vector<4x8xf32>
    %c11_119 = arith.constant 11 : index
    %c0_120 = arith.constant 0 : index
    %228 = vector.load %arg3[%c11_119, %c0_120] : memref<24x16xf32, #tpu.memory_space<vmem>>, vector<1x8xf32>
    %229 = vector.broadcast %228 : vector<1x8xf32> to vector<4x8xf32>
    %230 = arith.addf %227, %229 : vector<4x8xf32>
    %231 = arith.addf %230, %202 : vector<4x8xf32>
    %c8_121 = arith.constant 8 : index
    %c0_122 = arith.constant 0 : index
    %232 = vector.load %arg5[%c8_121, %c0_122] : memref<24x8xf32, #tpu.memory_space<vmem>>, vector<4x8xf32>
    tpu.vector_store %arg5[%c8_121, %c0_122], %231 {strides = array<i32>} : memref<24x8xf32, #tpu.memory_space<vmem>>, vector<4x8xf32>,
    %c9_123 = arith.constant 9 : index
    %c0_124 = arith.constant 0 : index
    %233 = tpu.strided_load %arg5[%c9_123, %c0_124] {strides = array<i32: 2, 1>} : memref<24x8xf32, #tpu.memory_space<vmem>>, vector<2x8xf32>
    %234 = tpu.iota {dimensions = array<i32: 0>} : vector<2x1xi32>
    %c0_i32 = arith.constant 0 : i32
    %235 = vector.broadcast %c0_i32 : i32 to vector<2x1xi32>
    %236 = arith.andi %234, %235 : vector<2x1xi32>
    %c1_i32_125 = arith.constant 1 : i32
    %237 = vector.broadcast %c1_i32_125 : i32 to vector<2x1xi32>
    %238 = arith.cmpi sge, %236, %237 : vector<2x1xi32>
    %c8_126 = arith.constant 8 : index
    %c0_127 = arith.constant 0 : index
    %239 = tpu.strided_load %arg5[%c8_126, %c0_127] {strides = array<i32: 2, 1>} : memref<24x8xf32, #tpu.memory_space<vmem>>, vector<2x8xf32>
    %c7_128 = arith.constant 7 : index
    %c0_129 = arith.constant 0 : index
    %240 = tpu.strided_load %arg5[%c7_128, %c0_129] {strides = array<i32: 2, 1>} : memref<24x8xf32, #tpu.memory_space<vmem>>, vector<2x8xf32>
    %cst_130 = arith.constant 0.000000e+00 : f32
    %241 = vector.shape_cast %238 : vector<2x1xi1> to vector<2x1xi1>
    %242 = vector.broadcast %241 : vector<2x1xi1> to vector<2x8xi1>
    %243 = vector.broadcast %cst_130 : f32 to vector<2x8xf32>
    %244 = arith.select %242, %240, %243 : vector<2x8xi1>, vector<2x8xf32>
    %245 = tpu.concatenate %244, %239 in 1 : vector<2x8xf32>, vector<2x8xf32> -> vector<2x16xf32>
    %c192 = arith.constant 192 : index
    %c0_131 = arith.constant 0 : index
    %246 = vector.load %arg2[%c192, %c0_131] : memref<256x16xf32, #tpu.memory_space<vmem>>, vector<16x8xf32>
    %cst_132 = arith.constant dense<0.000000e+00> : vector<2x8xf32>
    %247 = tpu.matmul %245, %246, %cst_132 {dimension_numbers = #tpu.dot_dimension_numbers<[1], [0], [0], [1], [0, 0, 1, 1], [], []>} : vector<2x16xf32>, vector<16x8xf32>, vector<2x8xf32> -> vector<2x8xf32>
    %c14 = arith.constant 14 : index
    %c0_133 = arith.constant 0 : index
    %248 = vector.load %arg3[%c14, %c0_133] : memref<24x16xf32, #tpu.memory_space<vmem>>, vector<1x8xf32>
    %249 = vector.broadcast %248 : vector<1x8xf32> to vector<2x8xf32>
    %250 = arith.addf %247, %249 : vector<2x8xf32>
    %251 = tpu.concatenate %69, %151, %233, %250 in 1 : vector<2x8xf32>, vector<2x8xf32>, vector<2x8xf32>, vector<2x8xf32> -> vector<2x32xf32>
    %c208 = arith.constant 208 : index
    %c0_134 = arith.constant 0 : index
    %252 = vector.load %arg2[%c208, %c0_134] : memref<256x16xf32, #tpu.memory_space<vmem>>, vector<32x8xf32>
    %cst_135 = arith.constant dense<0.000000e+00> : vector<2x8xf32>
    %253 = tpu.matmul %251, %252, %cst_135 {dimension_numbers = #tpu.dot_dimension_numbers<[1], [0], [0], [1], [0, 0, 1, 1], [], []>} : vector<2x32xf32>, vector<32x8xf32>, vector<2x8xf32> -> vector<2x8xf32>
    %c15_136 = arith.constant 15 : index
    %c0_137 = arith.constant 0 : index
    %254 = vector.load %arg3[%c15_136, %c0_137] : memref<24x16xf32, #tpu.memory_space<vmem>>, vector<1x8xf32>
    %255 = vector.broadcast %254 : vector<1x8xf32> to vector<2x8xf32>
    %256 = arith.addf %253, %255 : vector<2x8xf32>
    %cst_138 = arith.constant 0.000000e+00 : f32
    %257 = vector.broadcast %cst_138 : f32 to vector<2x8xf32>
    %258 = arith.maximumf %256, %257 : vector<2x8xf32>
    %c240 = arith.constant 240 : index
    %c0_139 = arith.constant 0 : index
    %259 = vector.load %arg2[%c240, %c0_139] : memref<256x16xf32, #tpu.memory_space<vmem>>, vector<8x8xf32>
    %cst_140 = arith.constant dense<0.000000e+00> : vector<2x8xf32>
    %260 = tpu.matmul %258, %259, %cst_140 {dimension_numbers = #tpu.dot_dimension_numbers<[1], [0], [0], [1], [0, 0, 1, 1], [], []>} : vector<2x8xf32>, vector<8x8xf32>, vector<2x8xf32> -> vector<2x8xf32>
    %c16_141 = arith.constant 16 : index
    %c0_142 = arith.constant 0 : index
    %261 = vector.load %arg3[%c16_141, %c0_142] : memref<24x16xf32, #tpu.memory_space<vmem>>, vector<1x8xf32>
    %262 = vector.broadcast %261 : vector<1x8xf32> to vector<2x8xf32>
    %263 = arith.addf %260, %262 : vector<2x8xf32>
    %cst_143 = arith.constant 0.000000e+00 : f32
    %264 = vector.broadcast %cst_143 : f32 to vector<2x8xf32>
    %265 = arith.maximumf %263, %264 : vector<2x8xf32>
    %c248 = arith.constant 248 : index
    %c0_144 = arith.constant 0 : index
    %266 = vector.load %arg2[%c248, %c0_144] : memref<256x16xf32, #tpu.memory_space<vmem>>, vector<8x12xf32>
    %cst_145 = arith.constant dense<0.000000e+00> : vector<2x12xf32>
    %267 = tpu.matmul %265, %266, %cst_145 {dimension_numbers = #tpu.dot_dimension_numbers<[1], [0], [0], [1], [0, 0, 1, 1], [], []>} : vector<2x8xf32>, vector<8x12xf32>, vector<2x12xf32> -> vector<2x12xf32>
    %c17 = arith.constant 17 : index
    %c0_146 = arith.constant 0 : index
    %268 = vector.load %arg3[%c17, %c0_146] : memref<24x16xf32, #tpu.memory_space<vmem>>, vector<1x12xf32>
    %269 = vector.broadcast %268 : vector<1x12xf32> to vector<2x12xf32>
    %270 = arith.addf %267, %269 : vector<2x12xf32>
    %cst_147 = arith.constant 0.000000e+00 : f32
    %271 = vector.broadcast %cst_147 : f32 to vector<2x12xf32>
    %272 = arith.maximumf %270, %271 : vector<2x12xf32>
    %273 = math.absf %270 : vector<2x12xf32>
    %cst_148 = arith.constant 0.000000e+00 : f32
    %274 = vector.broadcast %cst_148 : f32 to vector<2x12xf32>
    %275 = arith.subf %274, %273 : vector<2x12xf32>
    %276 = math.exp %275 : vector<2x12xf32>
    %cst_149 = arith.constant 1.000000e+00 : f32
    %277 = vector.broadcast %cst_149 : f32 to vector<2x12xf32>
    %278 = arith.addf %277, %276 : vector<2x12xf32>
    %279 = math.log %278 : vector<2x12xf32>
    %280 = arith.addf %272, %279 : vector<2x12xf32>
    %281 = tpu.iota {dimensions = array<i32: 1>} : vector<2x12xi32>
    %c8_i32 = arith.constant 8 : i32
    %282 = vector.broadcast %c8_i32 : i32 to vector<2x12xi32>
    %283 = arith.cmpi slt, %281, %282 : vector<2x12xi32>
    %cst_150 = arith.constant 1.1920929E-7 : f32
    %284 = vector.broadcast %cst_150 : f32 to vector<2x12xf32>
    %285 = arith.addf %280, %284 : vector<2x12xf32>
    %286 = arith.select %283, %270, %285 : vector<2x12xi1>, vector<2x12xf32>
    %c0_151 = arith.constant 0 : index
    %c0_152 = arith.constant 0 : index
    %287 = vector.load %arg4[%c0_151, %c0_152] : memref<2x12xf32, #tpu.memory_space<vmem>>, vector<2x12xf32>
    tpu.vector_store %arg4[%c0_151, %c0_152], %286 {strides = array<i32>} : memref<2x12xf32, #tpu.memory_space<vmem>>, vector<2x12xf32>,
    return
  }
  func.func @transform_0(%arg0: i32) -> (i32, i32) {
    %c0_i32 = arith.constant 0 : i32
    %c0_i32_0 = arith.constant 0 : i32
    %c0_i32_1 = arith.constant 0 : i32
    return %c0_i32, %c0_i32_0 : i32, i32
  }
  func.func @transform_1(%arg0: i32) -> (i32, i32) {
    %c0_i32 = arith.constant 0 : i32
    %c0_i32_0 = arith.constant 0 : i32
    %c0_i32_1 = arith.constant 0 : i32
    return %c0_i32, %c0_i32_0 : i32, i32
  }
  func.func @transform_2(%arg0: i32) -> (i32, i32) {
    %c0_i32 = arith.constant 0 : i32
    %c0_i32_0 = arith.constant 0 : i32
    %c0_i32_1 = arith.constant 0 : i32
    return %c0_i32, %c0_i32_0 : i32, i32
  }
  func.func @transform_3(%arg0: i32) -> (i32, i32) {
    %c0_i32 = arith.constant 0 : i32
    %c0_i32_0 = arith.constant 0 : i32
    %c0_i32_1 = arith.constant 0 : i32
    return %c0_i32, %c0_i32_0 : i32, i32
  }
}

</mosaic_0001>

<bundles_post_ra>
// kernel: wavenet_forward.1
= control target key start
LH: loop header
LB: loop body
LE: loop exit
PB: predicated region body
PF: predicated region fallthrough
CT: control target
= control target key end

     0   :  { %vm27_vm0 = vcmask 1041408   ;;  %vm20_vm1 = vcmask 80896   ;;  %vm2131_vm2 = vmmov 1   ;;  %vm14_vm4 = vcmask 64512   ;;  %s2134_s28 = smov 120   ;;  %s2137_s17 = smov 16   ;;  %s2496_s1 = inlined_call_operand.vmem [shape: f32[256,16], index: 1, kind: input, shape index: {}]   ;;  %s2497_s0 = inlined_call_operand.vmem [shape: f32[16,10], index: 0, kind: input, shape index: {}]   ;;  %s2498_s2 = inlined_call_operand.vmem [shape: f32[24,16], index: 2, kind: input, shape index: {}]   ;;  %s2499_s3 = inlined_call_operand.vmem [shape: f32[2,12], index: 3, kind: output, shape index: {}]  }
   0x1   :  { %v18_v0 = vld [vmem:[%s2496_s1] sm:$0xff]  ;;  %v19_v1 = vld [vmem:[%s2496_s1 + $0x8] sm:$0x3]  ;;  %vm2047_vm3 = vmpackc.low %vm27_vm0, %vm2131_vm2  ;;  %v2132_v5 = vmov 0.0   ;;  %v106_v11 = vlaneseq  ;;  %vm140_vm6 = vcmask 130048   ;;  %vm2136_vm8 = vmmov 0  }
   0x2   :  { %v2046_v2 = vpack.c.bf16 %v19_v1, %v18_v0  ;;  %v16_v3 = vld [vmem:[%s2497_s0] sm:$0xff]  ;;  %v17_v4 = vld [vmem:[%s2497_s0 + $0x8] sm:$0xff]  ;;  %15 = vst.msk [vmem:[#allocation2] sm:$0xff] %vm14_vm4, %v2132_v5  ;;  %v133_v6 = vld [vmem:[%s2496_s1 + $0x10] sm:$0xff]  ;;  %s2133_s0 = smov 8   ;;  %vm1099_vm11 = vcmask 60416  }
   0x3   :  { %1929 = vmatprep.mubr.msk.f32.mxu0 %vm20_vm1, %v16_v3  ;;  %v134_v7 = vld [vmem:[%s2496_s1 + $0x18] sm:$0xff]  ;;  %v2192_v12 = vshrl.u32 %v106_v11, 7  ;;  %v1829_v26 = vld [vmem:[%s2498_s2] ss:$0 sm:$0xff]  ;;  %v244_v38 = vld [vmem:[%s2496_s1 + $0x70] sm:$0xff]  ;;  %s2138_s27 = smov 24  }
   0x4   :  { %2048 = vmatprep.subr.msk.bf16.mxu0 %vm2047_vm3, %v2046_v2  ;;  %v2052_v8 = vpack.c.bf16 %v134_v7, %v133_v6  ;;  %v349_v48 = vld [vmem:[%s2496_s1 + $0x20] sm:$0xff]  ;;  %v350_v49 = vld [vmem:[%s2496_s1 + $0x28] sm:$0xff]  ;;  %vm1561_vm12 = vcmask 195584   ;;  %vm1572_vm13 = vcmask 261120   ;;  %vm1820_vm15 = vcmask 91136  }
   0x5   :  { %2051 = vmatpush3.bf16.msk.msra.mxu0 %vm2047_vm3, %v2046_v2  ;;  %v109_v13 = vand.u32 7, %v2192_v12  ;;  %v108_v14 = vadd.s32 8, %v2192_v12  ;;  %v2056_v50 = vpack.c.bf16 %v350_v49, %v349_v48  ;;  %v1832_v51 = vld [vmem:[%s2498_s2 + $0x6] ss:$0 sm:$0xff]  ;;  %v459_v2 = vld [vmem:[%s2496_s1 + $0x78] sm:$0xff] }
   0x6   :  { %2053 = vmatprep.subr.bf16.mxu1 %v2052_v8  ;;  %1939 = vmatprep.subr.mxu0 %v244_v38  ;;  %v1835_v3 = vld [vmem:[%s2498_s2 + $0x1] ss:$0 sm:$0xff]  ;;  %v1841_v48 = vld [vmem:[%s2498_s2 + $0xc] ss:$0 sm:$0xff] }
   0x7   :  { %2055 = vmatpush3.bf16.msra.mxu1 %v2052_v8  ;;  %vm2196_vm5 = vcmp.ge.s32.totalorder %v109_v13, 1  ;;  %v110_v17 = vand.u32 7, %v108_v14 }
   0x8   :  { %1930 = vmatmul.mubr.msk.f32.vlgmr.msra.gmra.mrb[0].mxu0 %vm20_vm1, %v17_v4  ;;  %2057 = vmatprep.subr.bf16.mxu1 %v2056_v50 }
   0x9   :  { %vm2203_vm7 = vcmp.ge.s32.totalorder %v110_v17, 1  ;;  %1940 = vmatpush3.msra.mxu0 %v244_v38 }
   0xa   :  { %1951 = vmatprep.subr.mxu0 %v459_v2 }
  0xdb   :  { %v2179_v9 = vpop.f32.mrb[0].mxu0 }
  0xdc   :  { %114 = vst.msk [vmem:[#allocation2 + $0x10] sm:$0xff] %vm14_vm4, %v2179_v9  ;;  %v2183_v10 = vpop.f32.mrb[1].mxu0 }
  0xdd   :  { %113 = vst.msk [vmem:[#allocation2 + $0x8] sm:$0xff] %vm14_vm4, %v2183_v10  ;;  %125 = vrot.lane.b32.xlu0 %v2183_v10, %s2133_s0 }
  0xe1   :  { %127 = vrot.lane.b32.xlu0 %v2179_v9, %s2133_s0 }
  0xe4   :  { %v115_v16 = vld [vmem:[#allocation2 + $0x7] sm:$0xff]  ;;  %v116_v22 = vld [vmem:[#allocation2 + $0xf] sm:$0xff] }
  0xe5   :  { %v121_v19 = vsel %vm2196_vm5, %v115_v16, 0.0  ;;  %v122_v24 = vsel %vm2203_vm7, %v116_v22, 0.0 }
 0x14f   :  { %v126_v18 = vpop.permute.xlu0 %125 }
 0x150   :  { %v131_v20 = vsel %vm14_vm4, %v121_v19, %v126_v18 }
 0x151   :  { %1936 = vmatprep.mubr.msk.f32.mxu1 %vm140_vm6, %v131_v20 }
 0x153   :  { %v128_v23 = vpop.permute.xlu0 %127 }
 0x154   :  { %v132_v25 = vsel %vm14_vm4, %v122_v24, %v128_v23 }
 0x155   :  { %1937 = vmatmul.mubr.msk.f32.vlgmr.msra.gmra.mrb[0].mxu1 %vm140_vm6, %v132_v25 }
 0x156   :  { %2059 = vmatpush3.bf16.msra.mxu1 %v2056_v50 }
 0x228   :  { %v1938_v27 = vpop.f32.mrb[0].mxu1 }
 0x229   :  { %v219_v28 = vadd.f32 %v1938_v27, %v1829_v26  ;;  %v213_v29 = vpop.f32.mrb[1].mxu1  ;;  %v566_v27 = vld [vmem:[%s2496_s1 + $0xa0] sm:$0xff] }
 0x22a   :  { %v214_v30 = vadd.f32 %v1829_v26, %v213_v29  ;;  %v2135_v29 = vmov 0.0|0.0  }
 0x22b   :  { %v225_v31 = vsub.f32 0.0, %v219_v28  ;;  %v223_v45 = vmax.f32 %v219_v28, 0.0  ;;  %v567_v28 = vld [vmem:[%s2496_s1 + $0xa8] sm:$0xff]  ;;  %2060 = vmatprep.subr.bf16.mxu1 %v2135_v29 }
 0x22c   :  { %v224_v32 = vsub.f32 0.0, %v214_v30  ;;  %v222_v42 = vmax.f32 %v214_v30, 0.0  ;;  %v2061_v30 = vpack.c.bf16 %v567_v28, %v566_v27 }
 0x22d   :  { %v228_v33 = vmul.f32 1.442695, %v225_v31  ;;  %v1838_v31 = vld [vmem:[%s2498_s2 + $0x7] ss:$0 sm:$0xff] }
 0x22e   :  { %v226_v34 = vmul.f32 1.442695, %v224_v32 }
 0x22f   :  { %2095 = vpow2.f32 %v228_v33 }
 0x230   :  { %2097 = vpow2.f32 %v226_v34 }
 0x239   :  { %v2096_v35 = vpop.eup %2095 }
 0x23a   :  { %v2098_v36 = vpop.eup %2097  ;;  %v231_v39 = vadd.f32 1.0, %v2096_v35 }
 0x23b   :  { %v230_v37 = vadd.f32 1.0, %v2098_v36 }
 0x23d   :  { %2099 = vrcp.f32 %v230_v37 }
 0x23e   :  { %2101 = vrcp.f32 %v231_v39  ;;  %v552_v39 = vand.u32 3, %v2192_v12 }
 0x240   :  { %vm2285_vm9 = vcmp.ge.s32.totalorder %v552_v39, 1 }
 0x247   :  { %v2100_v40 = vpop.eup %2099 }
 0x248   :  { %236 = vrot.lane.b32.xlu1 %v2100_v40, %s2134_s28  ;;  %v2102_v41 = vpop.eup %2101 }
 0x24c   :  { %238 = vrot.lane.b32.xlu1 %v2102_v41, %s2134_s28 }
 0x2ba   :  { %v237_v43 = vpop.permute.xlu1 %236 }
 0x2bb   :  { %v242_v44 = vmul.f32 %v237_v43, %v222_v42 }
 0x2bd   :  { %1941 = vmatprep.mubr.msk.f32.mxu0 %vm14_vm4, %v242_v44 }
 0x2be   :  { %v239_v46 = vpop.permute.xlu1 %238 }
 0x2bf   :  { %v243_v47 = vmul.f32 %v239_v46, %v223_v45  ;;  %v654_v45 = vld [vmem:[%s2496_s1 + $0x30] sm:$0xff]  ;;  %v655_v46 = vld [vmem:[%s2496_s1 + $0x38] sm:$0xff] }
 0x2c1   :  { %1942 = vmatmul.mubr.msk.f32.vlgmr.msra.gmra.mrb[2].mxu0 %vm14_vm4, %v243_v47  ;;  %v2064_v47 = vpack.c.bf16 %v655_v46, %v654_v45 }
 0x2c2   :  { %1952 = vmatpush3.msra.mxu0 %v459_v2 }
 0x2c3   :  { %2063 = vmatprep.subr.bf16.mxu0 %v2135_v29 }
 0x394   :  { %v1943_v52 = vpop.f32.mrb[2].mxu0 }
 0x395   :  { %v328_v53 = vadd.f32 %v1943_v52, %v1832_v51  ;;  %v322_v54 = vpop.f32.mrb[3].mxu0 }
 0x396   :  { %v323_v55 = vadd.f32 %v1832_v51, %v322_v54 }
 0x397   :  { %v2232_v56 = vadd.f32 %v2179_v9, %v328_v53 }
 0x398   :  { %v2235_v57 = vadd.f32 %v323_v55, %v2183_v10 }
 0x399   :  { %334 = vst.msk [vmem:[#allocation2 + $0x10] sm:$0xff] %vm14_vm4, %v2232_v56  ;;  %343 = vrot.lane.b32.xlu1 %v2232_v56, %s2133_s0 }
 0x39a   :  { %333 = vst.msk [vmem:[#allocation2 + $0x8] sm:$0xff] %vm14_vm4, %v2235_v57  ;;  %341 = vrot.lane.b32.xlu0 %v2235_v57, %s2133_s0 }
 0x3a1   :  { %v335_v58 = vld [vmem:[#allocation2 + $0x7] sm:$0xff]  ;;  %v336_v59 = vld [vmem:[#allocation2 + $0xf] sm:$0xff] }
 0x3a2   :  { %v337_v62 = vsel %vm2196_vm5, %v335_v58, 0.0  ;;  %v338_v63 = vsel %vm2203_vm7, %v336_v59, 0.0  ;;  %v1843_v58 = vld [vmem:[%s2498_s2 + $0x2] ss:$0 sm:$0xff] }
 0x40b   :  { %v344_v60 = vpop.permute.xlu1 %343 }
 0x40c   :  { %v342_v61 = vpop.permute.xlu0 %341  ;;  %v348_v1 = vsel %vm14_vm4, %v338_v63, %v344_v60 }
 0x40d   :  { %v347_v0 = vsel %vm14_vm4, %v337_v62, %v342_v61 }
 0x40e   :  { %1948 = vmatprep.mubr.msk.f32.mxu1 %vm140_vm6, %v347_v0 }
 0x40f   :  { %1949 = vmatmul.mubr.msk.f32.vlgmr.msra.gmra.mrb[2].mxu1 %vm140_vm6, %v348_v1 }
 0x410   :  { %2062 = vmatpush3.bf16.msra.mxu1 %v2061_v30  ;;  %1960 = vmatprep.mubr.msk.f32.mxu1 %vm2136_vm8, %v2132_v5 }
 0x411   :  { %1970 = vmatprep.subr.mxu1 %v2132_v5 }
 0x4e2   :  { %v1950_v4 = vpop.f32.mrb[2].mxu1 }
 0x4e3   :  { %v434_v6 = vadd.f32 %v1950_v4, %v1835_v3  ;;  %v428_v7 = vpop.f32.mrb[3].mxu1 }
 0x4e4   :  { %v429_v8 = vadd.f32 %v1835_v3, %v428_v7  ;;  %v833_v7 = vld [vmem:[%s2496_s1 + $0x40] sm:$0xff] }
 0x4e5   :  { %v440_v9 = vsub.f32 0.0, %v434_v6  ;;  %v438_v23 = vmax.f32 %v434_v6, 0.0 }
 0x4e6   :  { %v439_v10 = vsub.f32 0.0, %v429_v8  ;;  %v437_v22 = vmax.f32 %v429_v8, 0.0  ;;  %v834_v8 = vld [vmem:[%s2496_s1 + $0x48] sm:$0xff] }
 0x4e7   :  { %v443_v13 = vmul.f32 1.442695, %v440_v9  ;;  %v2067_v9 = vpack.c.bf16 %v834_v8, %v833_v7 }
 0x4e8   :  { %v441_v14 = vmul.f32 1.442695, %v439_v10  ;;  %v1845_v10 = vld [vmem:[%s2498_s2 + $0x8] ss:$0 sm:$0xff] }
 0x4e9   :  { %2103 = vpow2.f32 %v443_v13 }
 0x4ea   :  { %2105 = vpow2.f32 %v441_v14 }
 0x4f3   :  { %v2104_v15 = vpop.eup %2103 }
 0x4f4   :  { %v2106_v16 = vpop.eup %2105  ;;  %v446_v17 = vadd.f32 1.0, %v2104_v15 }
 0x4f5   :  { %v445_v18 = vadd.f32 1.0, %v2106_v16 }
 0x4f6   :  { %2107 = vrcp.f32 %v446_v17 }
 0x4f7   :  { %2109 = vrcp.f32 %v445_v18 }
 0x500   :  { %v2108_v19 = vpop.eup %2107 }
 0x501   :  { %v2110_v20 = vpop.eup %2109  ;;  %453 = vrot.lane.b32.xlu1 %v2108_v19, %s2134_s28 }
 0x502   :  { %451 = vrot.lane.b32.xlu0 %v2110_v20, %s2134_s28 }
 0x573   :  { %v454_v21 = vpop.permute.xlu1 %453 }
 0x574   :  { %v452_v24 = vpop.permute.xlu0 %451  ;;  %v458_v26 = vmul.f32 %v454_v21, %v438_v23  ;;  %v924_v21 = vld [vmem:[%s2496_s1 + $0x88] sm:$0xff] }
 0x575   :  { %v457_v25 = vmul.f32 %v452_v24, %v437_v22  ;;  %v1847_v22 = vld [vmem:[%s2498_s2 + $0x3] ss:$0 sm:$0xff] }
 0x577   :  { %1953 = vmatprep.mubr.msk.f32.mxu0 %vm14_vm4, %v457_v25 }
 0x578   :  { %1954 = vmatmul.mubr.msk.f32.vlgmr.msra.gmra.mrb[4].mxu0 %vm14_vm4, %v458_v26 }
 0x579   :  { %1967 = vmatprep.mubr.msk.f32.mxu0 %vm2136_vm8, %v2132_v5  ;;  %2065 = vmatpush3.bf16.msra.mxu0 %v2064_v47 }
 0x57a   :  { %2066 = vmatprep.subr.bf16.mxu0 %v2135_v29 }
 0x64b   :  { %v1955_v32 = vpop.f32.mrb[4].mxu0 }
 0x64c   :  { %v543_v33 = vadd.f32 %v1955_v32, %v1838_v31  ;;  %v537_v34 = vpop.f32.mrb[5].mxu0 }
 0x64d   :  { %v538_v35 = vadd.f32 %v1838_v31, %v537_v34 }
 0x64e   :  { %v547_v36 = vadd.f32 %v543_v33, %v2232_v56 }
 0x64f   :  { %v546_v37 = vadd.f32 %v538_v35, %v2235_v57  ;;  %v745_v57 = vld [vmem:[%s2496_s1 + $0x80] sm:$0xff]  ;;  %v1019_v35 = vld [vmem:[%s2496_s1 + $0xb0] sm:$0xff] }
 0x650   :  { %549 = vst.msk [vmem:[#allocation2 + $0x10] sm:$0xff] %vm14_vm4, %v547_v36  ;;  %v1020_v36 = vld [vmem:[%s2496_s1 + $0xb8] sm:$0xff] }
 0x651   :  { %548 = vst.msk [vmem:[#allocation2 + $0x8] sm:$0xff] %vm14_vm4, %v546_v37  ;;  %v2070_v37 = vpack.c.bf16 %v1020_v36, %v1019_v35 }
 0x658   :  { %v555_v38 = vld [vmem:[#allocation2 + $0x8] ss:$2 sm:$0xff]  ;;  %v557_v41 = vld [vmem:[#allocation2 + $0x7] ss:$2 sm:$0xff] }
 0x659   :  { %562 = vrot.lane.b32.xlu0 %v555_v38, %s2133_s0  ;;  %v560_v42 = vsel %vm2285_vm9, %v557_v41, 0.0  ;;  %v2305_v52 = vld [vmem:[#allocation2 + $0xf] ss:$8 sm:$0x3]  ;;  %v1849_v38 = vld [vmem:[%s2498_s2 + $0x9] ss:$0 sm:$0xff] }
 0x6cb   :  { %v563_v43 = vpop.permute.xlu0 %562 }
 0x6cc   :  { %v565_v44 = vsel %vm14_vm4, %v560_v42, %v563_v43 }
 0x6cd   :  { %1961 = vmatmul.mubr.msk.f32.vlgmr.msra.gmra.mrb[4].mxu1 %vm140_vm6, %v565_v44  ;;  %v1007_v44 = vand.u32 1, %v2192_v12  ;;  %v1108_v12 = vld [vmem:[%s2496_s1 + $0x50] sm:$0xff] }
 0x6ce   :  { %1972 = vmatprep.mubr.msk.f32.mxu1 %vm2136_vm8, %v2132_v5  ;;  %1971 = vmatpush3.msra.mxu1 %v745_v57 }
 0x6cf   :  { %1982 = vmatprep.subr.mxu1 %v2132_v5  ;;  %vm2368_vm10 = vcmp.ge.s32.totalorder %v1007_v44, 1 }
 0x7a0   :  { %v642_v49 = vpop.f32.mrb[4].mxu1 }
 0x7a1   :  { %v643_v50 = vadd.f32 %v1841_v48, %v642_v49  ;;  %v1962_v51 = vpop.f32.mrb[5].mxu1 }
 0x7a3   :  { %646 = vst.msk [vmem:[#allocation2 + $0x8] sm:$0xff] %vm14_vm4, %v643_v50  ;;  %650 = vrot.lane.b32.xlu1 %v643_v50, %s2133_s0 }
 0x7aa   :  { %v647_v53 = vld [vmem:[#allocation2 + $0x7] sm:$0xff] }
 0x7ab   :  { %v648_v55 = vsel %vm2285_vm9, %v647_v53, 0.0  ;;  %v1851_v53 = vld [vmem:[%s2498_s2 + $0xd] ss:$0 sm:$0xff] }
 0x815   :  { %v651_v54 = vpop.permute.xlu1 %650 }
 0x816   :  { %v653_v56 = vsel %vm14_vm4, %v648_v55, %v651_v54 }
 0x817   :  { %1968 = vmatmul.mubr.msk.f32.vlgmr.msra.gmra.mrb[6].mxu0 %vm140_vm6, %v653_v56 }
 0x818   :  { %1979 = vmatprep.mubr.msk.f32.mxu0 %vm2136_vm8, %v2132_v5  ;;  %2068 = vmatpush3.bf16.msra.mxu0 %v2067_v9 }
 0x819   :  { %2069 = vmatprep.subr.bf16.mxu0 %v2135_v29 }
 0x8ea   :  { %v730_v59 = vpop.f32.mrb[6].mxu0 }
 0x8eb   :  { %v731_v60 = vadd.f32 %v1843_v58, %v730_v59  ;;  %v1969_v61 = vpop.f32.mrb[7].mxu0 }
 0x8ed   :  { %v735_v62 = vsub.f32 0.0, %v731_v60  ;;  %v734_v3 = vmax.f32 %v731_v60, 0.0 }
 0x8ef   :  { %v736_v63 = vmul.f32 1.442695, %v735_v62  ;;  %v1199_v62 = vld [vmem:[%s2496_s1 + $0x90] sm:$0xff] }
 0x8f1   :  { %2111 = vpow2.f32 %v736_v63  ;;  %v1853_v63 = vld [vmem:[%s2498_s2 + $0x4] ss:$0 sm:$0xff] }
 0x8fb   :  { %v2112_v0 = vpop.eup %2111 }
 0x8fc   :  { %v738_v1 = vadd.f32 1.0, %v2112_v0 }
 0x8fe   :  { %2113 = vrcp.f32 %v738_v1 }
 0x908   :  { %v2114_v2 = vpop.eup %2113 }
 0x909   :  { %741 = vrot.lane.b32.xlu0 %v2114_v2, %s2134_s28 }
 0x97b   :  { %v742_v4 = vpop.permute.xlu0 %741 }
 0x97c   :  { %v744_v6 = vmul.f32 %v742_v4, %v734_v3 }
 0x97e   :  { %1973 = vmatmul.mubr.msk.f32.vlgmr.msra.gmra.mrb[6].mxu1 %vm14_vm4, %v744_v6 }
 0x97f   :  { %1984 = vmatprep.mubr.msk.f32.mxu1 %vm2136_vm8, %v2132_v5  ;;  %1983 = vmatpush3.msra.mxu1 %v924_v21 }
 0x980   :  { %2072 = vmatprep.subr.bf16.mxu1 %v2135_v29 }
 0xa51   :  { %v820_v13 = vpop.f32.mrb[6].mxu1 }
 0xa52   :  { %v821_v14 = vadd.f32 %v1845_v10, %v820_v13  ;;  %v1974_v15 = vpop.f32.mrb[7].mxu1 }
 0xa53   :  { %v1288_v15 = vld [vmem:[%s2496_s1 + $0x68] sm:$0xff] }
 0xa54   :  { %v824_v16 = vadd.f32 %v821_v14, %v643_v50  ;;  %v1109_v50 = vld [vmem:[%s2496_s1 + $0x58] sm:$0xff]  ;;  %v1287_v14 = vld [vmem:[%s2496_s1 + $0x60] sm:$0xff] }
 0xa55   :  { %v2073_v51 = vpack.c.bf16 %v1109_v50, %v1108_v12 }
 0xa56   :  { %825 = vst.msk [vmem:[#allocation2 + $0x8] sm:$0xff] %vm14_vm4, %v824_v16  ;;  %829 = vrot.lane.b32.xlu1 %v824_v16, %s2133_s0 }
 0xa5d   :  { %v826_v17 = vld [vmem:[#allocation2 + $0x7] sm:$0xff] }
 0xa5e   :  { %v827_v19 = vsel %vm2285_vm9, %v826_v17, 0.0  ;;  %v1855_v17 = vld [vmem:[%s2498_s2 + $0xa] ss:$0 sm:$0xff] }
 0xac8   :  { %v830_v18 = vpop.permute.xlu1 %829 }
 0xac9   :  { %v832_v20 = vsel %vm14_vm4, %v827_v19, %v830_v18 }
 0xaca   :  { %1980 = vmatmul.mubr.msk.f32.vlgmr.msra.gmra.mrb[8].mxu0 %vm140_vm6, %v832_v20 }
 0xacb   :  { %1991 = vmatprep.mubr.msk.f32.mxu0 %vm2136_vm8, %v2132_v5  ;;  %2071 = vmatpush3.bf16.msra.mxu0 %v2070_v37 }
 0xacc   :  { %2001 = vmatprep.subr.mxu0 %v2132_v5 }
 0xb9d   :  { %v909_v23 = vpop.f32.mrb[8].mxu0 }
 0xb9e   :  { %v910_v24 = vadd.f32 %v1847_v22, %v909_v23  ;;  %v1981_v25 = vpop.f32.mrb[9].mxu0 }
 0xba0   :  { %v914_v26 = vsub.f32 0.0, %v910_v24  ;;  %v913_v32 = vmax.f32 %v910_v24, 0.0 }
 0xba2   :  { %v915_v27 = vmul.f32 1.442695, %v914_v26  ;;  %v1378_v26 = vld [vmem:[%s2496_s1 + $0x98] sm:$0xff] }
 0xba4   :  { %2115 = vpow2.f32 %v915_v27  ;;  %v1857_v27 = vld [vmem:[%s2498_s2 + $0x5] ss:$0 sm:$0xff] }
 0xbae   :  { %v2116_v28 = vpop.eup %2115 }
 0xbaf   :  { %v917_v30 = vadd.f32 1.0, %v2116_v28 }
 0xbb1   :  { %2117 = vrcp.f32 %v917_v30 }
 0xbbb   :  { %v2118_v31 = vpop.eup %2117 }
 0xbbc   :  { %920 = vrot.lane.b32.xlu0 %v2118_v31, %s2134_s28 }
 0xc2e   :  { %v921_v33 = vpop.permute.xlu0 %920 }
 0xc2f   :  { %v923_v34 = vmul.f32 %v921_v33, %v913_v32 }
 0xc31   :  { %1985 = vmatmul.mubr.msk.f32.vlgmr.msra.gmra.mrb[8].mxu1 %vm14_vm4, %v923_v34 }
 0xc32   :  { %1998 = vmatprep.mubr.msk.f32.mxu1 %vm2136_vm8, %v2132_v5  ;;  %2074 = vmatpush3.bf16.msra.mxu1 %v2073_v51  ;;  %v1563_v51 = vld [vmem:[%s2496_s1 + $0xd0] sm:$0xff] }
 0xc33   :  { %2075 = vmatprep.subr.bf16.mxu1 %v2135_v29 }
 0xd04   :  { %v999_v39 = vpop.f32.mrb[8].mxu1 }
 0xd05   :  { %v1000_v40 = vadd.f32 %v1849_v38, %v999_v39  ;;  %v1986_v41 = vpop.f32.mrb[9].mxu1 }
 0xd06   :  { %v1468_v41 = vld [vmem:[%s2496_s1 + $0xc8] sm:$0xff] }
 0xd07   :  { %v1003_v42 = vadd.f32 %v1000_v40, %v824_v16  ;;  %v2076_v16 = vpack.c.bf16 %v1288_v15, %v1287_v14  ;;  %v1467_v40 = vld [vmem:[%s2496_s1 + $0xc0] sm:$0xff] }
 0xd09   :  { %1004 = vst.msk [vmem:[#allocation2 + $0x8] sm:$0xff] %vm14_vm4, %v1003_v42  ;;  %v2079_v42 = vpack.c.bf16 %v1468_v41, %v1467_v40 }
 0xd10   :  { %v1009_v43 = vld [vmem:[#allocation2 + $0x8] ss:$2 sm:$0xf]  ;;  %v1010_v46 = vld [vmem:[#allocation2 + $0x7] ss:$2 sm:$0xf] }
 0xd11   :  { %1015 = vrot.lane.b32.xlu1 %v1009_v43, %s2133_s0  ;;  %v1013_v47 = vsel %vm2368_vm10, %v1010_v46, 0.0  ;;  %v1006_v57 = vld [vmem:[#allocation2 + $0xb] ss:$4 sm:$0x3] }
 0xd12   :  { %v1859_v43 = vld [vmem:[%s2498_s2 + $0xb] ss:$0 sm:$0xff] }
 0xd83   :  { %v1016_v48 = vpop.permute.xlu1 %1015 }
 0xd84   :  { %v1018_v49 = vsel %vm14_vm4, %v1013_v47, %v1016_v48 }
 0xd85   :  { %1992 = vmatmul.mubr.msk.f32.vlgmr.msra.gmra.mrb[10].mxu0 %vm140_vm6, %v1018_v49 }
 0xd86   :  { %2003 = vmatprep.mubr.msk.f32.mxu0 %vm2136_vm8, %v2132_v5  ;;  %2002 = vmatpush3.msra.mxu0 %v1199_v62 }
 0xd87   :  { %2013 = vmatprep.subr.mxu0 %v2132_v5 }
 0xe58   :  { %v1095_v54 = vpop.f32.mrb[10].mxu0 }
 0xe59   :  { %v1096_v55 = vadd.f32 %v1851_v53, %v1095_v54  ;;  %v1993_v56 = vpop.f32.mrb[11].mxu0  ;;  %v1564_v53 = vld [vmem:[%s2496_s1 + $0xd8] sm:$0xff]  ;;  %v1565_v54 = vld [vmem:[%s2496_s1 + $0xe0] sm:$0xff] }
 0xe5a   :  { %v1566_v56 = vld [vmem:[%s2496_s1 + $0xe8] sm:$0xff] }
 0xe5b   :  { %1104 = vrot.lane.b32.xlu0 %v1096_v55, %s2133_s0  ;;  %1100 = vst.msk [vmem:[#allocation2 + $0x8] sm:$0xf] %vm1099_vm11, %v1096_v55 }
 0xe62   :  { %v1101_v58 = vld [vmem:[#allocation2 + $0x7] sm:$0xf] }
 0xe63   :  { %v1102_v60 = vsel %vm2368_vm10, %v1101_v58, 0.0  ;;  %v1861_v58 = vld [vmem:[%s2498_s2 + $0xe] ss:$0 sm:$0xff] }
 0xecd   :  { %v1105_v59 = vpop.permute.xlu0 %1104 }
 0xece   :  { %v1107_v61 = vsel %vm14_vm4, %v1102_v60, %v1105_v59 }
 0xecf   :  { %1999 = vmatmul.mubr.msk.f32.vlgmr.msra.gmra.mrb[10].mxu1 %vm140_vm6, %v1107_v61 }
 0xed0   :  { %2010 = vmatprep.mubr.msk.f32.mxu1 %vm2136_vm8, %v2132_v5  ;;  %2077 = vmatpush3.bf16.msra.mxu1 %v2076_v16 }
 0xed1   :  { %2078 = vmatprep.subr.bf16.mxu1 %v2135_v29 }
 0xfa2   :  { %v1184_v0 = vpop.f32.mrb[10].mxu1 }
 0xfa3   :  { %v1185_v1 = vadd.f32 %v1853_v63, %v1184_v0  ;;  %v2000_v2 = vpop.f32.mrb[11].mxu1 }
 0xfa5   :  { %v1189_v3 = vsub.f32 0.0, %v1185_v1  ;;  %v1188_v9 = vmax.f32 %v1185_v1, 0.0 }
 0xfa7   :  { %v1190_v4 = vmul.f32 1.442695, %v1189_v3  ;;  %v1647_v3 = vld [vmem:[%s2496_s1 + $0xf0] sm:$0xff] }
 0xfa9   :  { %2119 = vpow2.f32 %v1190_v4  ;;  %v1863_v4 = vld [vmem:[%s2498_s2 + $0xf] ss:$0 sm:$0xff] }
 0xfb3   :  { %v2120_v6 = vpop.eup %2119 }
 0xfb4   :  { %v1192_v7 = vadd.f32 1.0, %v2120_v6 }
 0xfb6   :  { %2121 = vrcp.f32 %v1192_v7 }
 0xfc0   :  { %v2122_v8 = vpop.eup %2121 }
 0xfc1   :  { %1195 = vrot.lane.b32.xlu1 %v2122_v8, %s2134_s28 }
0x1033   :  { %v1196_v10 = vpop.permute.xlu1 %1195 }
0x1034   :  { %v1198_v13 = vmul.f32 %v1196_v10, %v1188_v9  ;;  %v1727_v9 = vld [vmem:[%s2496_s1 + $0xf8] sm:$0xff]  ;;  %v1865_v10 = vld [vmem:[%s2498_s2 + $0x10] ss:$0 sm:$0xff] }
0x1036   :  { %2004 = vmatmul.mubr.msk.f32.vlgmr.msra.gmra.mrb[12].mxu0 %vm14_vm4, %v1198_v13 }
0x1037   :  { %2015 = vmatprep.mubr.msk.f32.mxu0 %vm2136_vm8, %v2132_v5  ;;  %2014 = vmatpush3.msra.mxu0 %v1378_v26  ;;  %v1816_v26 = vand.u32 127, %v106_v11 }
0x1038   :  { %2081 = vmatprep.subr.bf16.mxu0 %v2135_v29 }
0x1039   :  { %vm1817_vm14 = vcmp.lt.s32.totalorder %v1816_v26, 8 }
0x1109   :  { %v1274_v18 = vpop.f32.mrb[12].mxu0 }
0x110a   :  { %v1275_v19 = vadd.f32 %v1855_v17, %v1274_v18  ;;  %v2005_v20 = vpop.f32.mrb[13].mxu0  ;;  %v1867_v17 = vld [vmem:[%s2498_s2 + $0x11] ss:$0 sm:$0xff] }
0x110c   :  { %v1278_v21 = vadd.f32 %v1275_v19, %v1096_v55  ;;  %v2082_v55 = vpack.c.bf16 %v1564_v53, %v1563_v51 }
0x110e   :  { %1279 = vst.msk [vmem:[#allocation2 + $0x8] sm:$0xf] %vm1099_vm11, %v1278_v21  ;;  %1283 = vrot.lane.b32.xlu0 %v1278_v21, %s2133_s0 }
0x1115   :  { %v1280_v22 = vld [vmem:[#allocation2 + $0x7] sm:$0xf] }
0x1116   :  { %v1281_v24 = vsel %vm2368_vm10, %v1280_v22, 0.0 }
0x1180   :  { %v1284_v23 = vpop.permute.xlu0 %1283 }
0x1181   :  { %v1286_v25 = vsel %vm14_vm4, %v1281_v24, %v1284_v23 }
0x1182   :  { %2011 = vmatmul.mubr.msk.f32.vlgmr.msra.gmra.mrb[12].mxu1 %vm140_vm6, %v1286_v25 }
0x1183   :  { %2022 = vmatprep.mubr.msk.f32.mxu1 %vm2136_vm8, %v2132_v5  ;;  %2080 = vmatpush3.bf16.msra.mxu1 %v2079_v42 }
0x1184   :  { %2036 = vmatprep.subr.mxu1 %v2132_v5 }
0x1255   :  { %v1363_v28 = vpop.f32.mrb[12].mxu1 }
0x1256   :  { %v1364_v30 = vadd.f32 %v1857_v27, %v1363_v28  ;;  %v2012_v31 = vpop.f32.mrb[13].mxu1 }
0x1258   :  { %v1368_v32 = vsub.f32 0.0, %v1364_v30  ;;  %v1367_v37 = vmax.f32 %v1364_v30, 0.0 }
0x125a   :  { %v1369_v33 = vmul.f32 1.442695, %v1368_v32 }
0x125c   :  { %2123 = vpow2.f32 %v1369_v33 }
0x1266   :  { %v2124_v34 = vpop.eup %2123 }
0x1267   :  { %v1371_v35 = vadd.f32 1.0, %v2124_v34 }
0x1269   :  { %2125 = vrcp.f32 %v1371_v35 }
0x1273   :  { %v2126_v36 = vpop.eup %2125 }
0x1274   :  { %1374 = vrot.lane.b32.xlu1 %v2126_v36, %s2134_s28 }
0x1278   :  { %1548 = vrot.lane.b32.xlu1 %v1006_v57, %s2133_s0  ;;  %v2085_v57 = vpack.c.bf16 %v1566_v56, %v1565_v54 }
0x12e6   :  { %v1375_v38 = vpop.permute.xlu1 %1374 }
0x12e7   :  { %v1377_v39 = vmul.f32 %v1375_v38, %v1367_v37 }
0x12e9   :  { %2016 = vmatmul.mubr.msk.f32.vlgmr.msra.gmra.mrb[14].mxu0 %vm14_vm4, %v1377_v39 }
0x12ea   :  { %2033 = vmatprep.mubr.msk.f32.mxu0 %vm2136_vm8, %v2132_v5  ;;  %2083 = vmatpush3.bf16.msra.mxu0 %v2082_v55  ;;  %v1549_v62 = vpop.permute.xlu1 %1548 }
0x12eb   :  { %2084 = vmatprep.subr.bf16.mxu0 %v2135_v29  ;;  %v1559_v0 = vsel %vm14_vm4, %v2305_v52, %v1549_v62 }
0x12ee   :  { %2086 = vmatpush3.bf16.msra.mxu0 %v2085_v57 }
0x13bc   :  { %v1453_v44 = vpop.f32.mrb[14].mxu0 }
0x13bd   :  { %v1454_v45 = vadd.f32 %v1859_v43, %v1453_v44  ;;  %v2017_v46 = vpop.f32.mrb[15].mxu0 }
0x13bf   :  { %v1457_v47 = vadd.f32 %v1454_v45, %v1278_v21 }
0x13c1   :  { %1458 = vst.msk [vmem:[#allocation2 + $0x8] sm:$0xf] %vm1099_vm11, %v1457_v47 }
0x13c8   :  { %v1461_v48 = vld [vmem:[#allocation2 + $0x8] ss:$2 sm:$0x3]  ;;  %v1460_v49 = vld [vmem:[#allocation2 + $0x9] ss:$2 sm:$0x3] }
0x13c9   :  { %1463 = vrot.lane.b32.xlu0 %v1461_v48, %s2133_s0 }
0x13cd   :  { %1552 = vrot.lane.b32.xlu0 %v1460_v49, %s2137_s17 }
0x143b   :  { %v1464_v12 = vpop.permute.xlu0 %1463 }
0x143c   :  { %v1466_v50 = vsel %vm14_vm4, 0.0, %v1464_v12 }
0x143d   :  { %2023 = vmatmul.mubr.msk.f32.vlgmr.msra.gmra.mrb[14].mxu1 %vm140_vm6, %v1466_v50 }
0x143e   :  { %2038 = vmatprep.mubr.msk.f32.mxu1 %vm2136_vm8, %v2132_v5  ;;  %2037 = vmatpush3.msra.mxu1 %v1647_v3 }
0x143f   :  { %v1553_v63 = vpop.permute.xlu0 %1552  ;;  %2041 = vmatprep.subr.mxu1 %v2132_v5 }
0x1440   :  { %v1560_v1 = vsel %vm140_vm6, %v1559_v0, %v1553_v63 }
0x1510   :  { %v1543_v59 = vpop.f32.mrb[14].mxu1 }
0x1511   :  { %v1544_v60 = vadd.f32 %v1861_v58, %v1543_v59  ;;  %v2024_v61 = vpop.f32.mrb[15].mxu1 }
0x1513   :  { %1556 = vrot.lane.b32.xlu1 %v1544_v60, %s2138_s27 }
0x1585   :  { %v1557_v29 = vpop.permute.xlu1 %1556 }
0x1586   :  { %v1562_v2 = vsel %vm1561_vm12, %v1560_v1, %v1557_v29 }
0x1587   :  { %2034 = vmatmul.mubr.msk.f32.vlgmr.msra.gmra.mrb[16].mxu0 %vm1572_vm13, %v1562_v2 }
0x165a   :  { %v1642_v6 = vpop.f32.mrb[16].mxu0 }
0x165b   :  { %v1643_v7 = vadd.f32 %v1863_v4, %v1642_v6  ;;  %v2035_v52 = vpop.f32.mrb[17].mxu0 }
0x165d   :  { %v1646_v8 = vmax.f32 %v1643_v7, 0.0 }
0x165f   :  { %2039 = vmatmul.mubr.msk.f32.vlgmr.msra.gmra.mrb[16].mxu1 %vm14_vm4, %v1646_v8 }
0x1660   :  { %2043 = vmatprep.mubr.msk.f32.mxu1 %vm2136_vm8, %v2132_v5  ;;  %2042 = vmatpush3.msra.mxu1 %v1727_v9 }
0x1732   :  { %v1722_v13 = vpop.f32.mrb[16].mxu1 }
0x1733   :  { %v1723_v14 = vadd.f32 %v1865_v10, %v1722_v13  ;;  %v2040_v15 = vpop.f32.mrb[17].mxu1 }
0x1735   :  { %v1726_v16 = vmax.f32 %v1723_v14, 0.0 }
0x1737   :  { %2044 = vmatmul.mubr.msk.f32.vlgmr.msra.gmra.mrb[18].mxu1 %vm14_vm4, %v1726_v16 }
0x180a   :  { %v1802_v5 = vpop.f32.mrb[18].mxu1 }
0x180b   :  { %v1803_v18 = vadd.f32 %v1867_v17, %v1802_v5  ;;  %v2045_v19 = vpop.f32.mrb[19].mxu1 }
0x180d   :  { %v1807_v20 = vand.u32 2147483647, %v1803_v18  ;;  %v1806_v27 = vmax.f32 %v1803_v18, 0.0 }
0x180f   :  { %v1808_v21 = vsub.f32 0.0, %v1807_v20 }
0x1811   :  { %v1809_v22 = vmul.f32 1.442695, %v1808_v21 }
0x1813   :  { %2127 = vpow2.f32 %v1809_v22 }
0x181d   :  { %v2128_v23 = vpop.eup %2127 }
0x181e   :  { %v1811_v24 = vadd.f32 1.0, %v2128_v23 }
0x1820   :  { %2129 = vlog2.f32 %v1811_v24 }
0x182a   :  { %v2130_v25 = vpop.eup %2129 }
0x182b   :  { %v1813_v28 = vmul.f32 0.6931472, %v2130_v25 }
0x182d   :  { %v1814_v30 = vadd.f32 %v1813_v28, %v1806_v27 }
0x182f   :  { %v1818_v31 = vadd.f32 1.1920929e-07, %v1814_v30 }
0x1831   :  { %v1819_v32 = vsel %vm1817_vm14, %v1803_v18, %v1818_v31 }
0x1832   :  { %1821 = vst.msk [vmem:[%s2499_s3] sm:$0x3] %vm1820_vm15, %v1819_v32 }

</bundles_post_ra>
